<compile_context>
chip_gen: v5e
topology: v5e:2x2
jax: 0.10.0
libtpu: 0.0.40
codegen_flags: <defaults>
</compile_context>

<pallas_src>
import jax
import jax.numpy as jnp
from jax.experimental import pallas as pl
from jax.experimental.pallas import tpu as pltpu


def _combined_kernel(x_ref, w1_ref, b1_ref, w2_ref, b2_ref, o_ref):
    # Stage 1: "rna_model" -> relu(x @ W1 + b1)
    # x arrives in the caller dtype; cast to bf16 in-kernel (no separate XLA
    # pass over x in HBM), accumulate in f32 on the MXU.
    x = x_ref[...].astype(jnp.bfloat16)
    h = jnp.dot(x, w1_ref[...], preferred_element_type=jnp.float32)
    h = jnp.maximum(h + b1_ref[...], 0.0)          # b1 is [1, H], broadcasts

    # Stage 2: "adt_model" -> h @ W2 + b2 (fused epilogue, f32 accumulation).
    y = jnp.dot(h.astype(jnp.bfloat16), w2_ref[...],
                preferred_element_type=jnp.float32)
    o_ref[...] = (y + b2_ref[...]).astype(o_ref.dtype)   # b2 is [1, D_out]


def combined_model_forward(x, w1, b1, w2, b2, *, block_b=512,
                           out_dtype=jnp.float32):
    """x: [B, D_in], w1: [D_in, H], b1: [H], w2: [H, D_out], b2: [D_out].

    Feature dims (D_in, H, D_out) must be multiples of 128 (lane-dense tiles).
    The batch axis is tiled with up to `block_b` rows per grid step; a partial
    last tile is handled by Pallas' masked writeback (rows are independent).
    """
    B, D_in = x.shape
    H = w1.shape[1]
    D_out = w2.shape[1]
    assert D_in % 128 == 0 and H % 128 == 0 and D_out % 128 == 0, (
        "feature dims must be multiples of 128 for lane-dense tiles")

    # bf16 MXU weights; f32 biases added to the f32 accumulator.
    w1_bf = w1.astype(jnp.bfloat16)
    w2_bf = w2.astype(jnp.bfloat16)
    b1_2d = b1.reshape(1, H).astype(jnp.float32)
    b2_2d = b2.reshape(1, D_out).astype(jnp.float32)

    x_item = jnp.dtype(x.dtype).itemsize
    out_item = jnp.dtype(out_dtype).itemsize

    # Resident (single-buffered) weights/biases + per-tile streaming buffers.
    resident_bytes = (D_in * H + H * D_out) * 2 + (H + D_out) * 4

    def vmem_need(tb):
        return (resident_bytes
                + 2 * tb * D_in * x_item       # x tile, double-buffered
                + 2 * tb * D_out * out_item    # out tile, double-buffered
                + 2 * tb * H * 4)              # f32 intermediate h + slack

    # Biggest batch tile that fits a cross-generation VMEM budget
    # (48 MiB keeps headroom on v7x's 64 MiB physical VMEM).
    tb = B if B <= block_b else block_b
    if tb < B:
        tb = max(8, (tb // 8) * 8)
    budget = 48 << 20
    while vmem_need(tb) > budget and tb > 8:
        new_tb = max(8, ((tb // 2) // 8) * 8)
        if new_tb == tb:
            break
        tb = new_tb

    # Scoped-VMEM limit sized from the tile budget (default scoped limit is
    # 16 MiB on v5e / 32 MiB on v6e+v7x, well below physical).
    vmem_limit = int(min(max(2 * vmem_need(tb), 32 << 20), 64 << 20))

    grid = (pl.cdiv(B, tb),)

    def _resident_spec(shape, single_buffer):
        # Constant index_map -> block never changes; single-buffer it.
        if single_buffer:
            return pl.BlockSpec(shape, lambda i: (0, 0),
                                pipeline_mode=pl.Buffered(1))
        return pl.BlockSpec(shape, lambda i: (0, 0))

    def _run(single_buffer_residents):
        return pl.pallas_call(
            _combined_kernel,
            out_shape=jax.ShapeDtypeStruct((B, D_out), out_dtype),
            grid=grid,
            in_specs=[
                # Activations stream per batch tile.
                pl.BlockSpec((tb, D_in), lambda i: (i, 0)),
                # Weights / biases resident in VMEM across the whole grid.
                _resident_spec((D_in, H), single_buffer_residents),
                _resident_spec((1, H), single_buffer_residents),
                _resident_spec((H, D_out), single_buffer_residents),
                _resident_spec((1, D_out), single_buffer_residents),
            ],
            out_specs=pl.BlockSpec((tb, D_out), lambda i: (i, 0)),
            compiler_params=pltpu.CompilerParams(
                # Batch tiles are independent -> megacore sharding on v7x.
                dimension_semantics=("parallel",),
                vmem_limit_bytes=vmem_limit,
            ),
        )(x, w1_bf, b1_2d, w2_bf, b2_2d)

    try:
        return _run(True)
    except Exception:
        # TODO(synk): fallback to default double-buffering if this jax build
        # rejects pl.Buffered(1) for constant-index (resident) blocks.
        return _run(False)


def _reference(x, w1, b1, w2, b2):
    h = jnp.maximum(x @ w1 + b1, 0.0)
    return h @ w2 + b2


if __name__ == "__main__":
    key = jax.random.PRNGKey(0)
    kx, k1, k2, k3, k4 = jax.random.split(key, 5)

    # Lane-dense, MXU-friendly shapes (still small): batch 256, 128->256->128.
    B, D_IN, HID, D_OUT = 256, 128, 256, 128
    x = jax.random.normal(kx, (B, D_IN), dtype=jnp.float32)
    w1 = jax.random.normal(k1, (D_IN, HID), dtype=jnp.float32) * 0.05
    b1 = jax.random.normal(k2, (HID,), dtype=jnp.float32) * 0.05
    w2 = jax.random.normal(k3, (HID, D_OUT), dtype=jnp.float32) * 0.05
    b2 = jax.random.normal(k4, (D_OUT,), dtype=jnp.float32) * 0.05

    out = combined_model_forward(x, w1, b1, w2, b2)
    out = jax.block_until_ready(out)

    ref = _reference(x, w1, b1, w2, b2)
    assert out.shape == (B, D_OUT)
    # bf16 operands with f32 accumulation -> loosened tolerance vs f32 ref.
    assert jnp.allclose(out, ref, atol=5e-2, rtol=5e-2), (
        float(jnp.max(jnp.abs(out - ref))))

    print("KERNEL_OK")
</pallas_src>

<mosaic_0001>
module attributes {stable_mosaic.version = 11 : i64} {
  func.func @_combined_kernel(%arg0: i32, %arg1: memref<256x128xf32, #tpu.memory_space<vmem>>, %arg2: memref<128x256xbf16, #tpu.memory_space<vmem>>, %arg3: memref<1x256xf32, #tpu.memory_space<vmem>>, %arg4: memref<256x128xbf16, #tpu.memory_space<vmem>>, %arg5: memref<1x128xf32, #tpu.memory_space<vmem>>, %arg6: memref<256x128xf32, #tpu.memory_space<vmem>>) attributes {dimension_semantics = [#tpu.dimension_semantics<parallel>], iteration_bounds = array<i64: 1>, scalar_prefetch = 0 : i64, scratch_operands = 0 : i64, tpu.core_type = #tpu.core_type<tc>, window_params = [{transform_indices = @transform_0, window_bounds = array<i64: 256, 128>}, {pipeline_mode = #tpu.pipeline_mode<synchronous>, transform_indices = @transform_1, window_bounds = array<i64: 128, 256>}, {pipeline_mode = #tpu.pipeline_mode<synchronous>, transform_indices = @transform_2, window_bounds = array<i64: 1, 256>}, {pipeline_mode = #tpu.pipeline_mode<synchronous>, transform_indices = @transform_3, window_bounds = array<i64: 256, 128>}, {pipeline_mode = #tpu.pipeline_mode<synchronous>, transform_indices = @transform_4, window_bounds = array<i64: 1, 128>}, {transform_indices = @transform_5, window_bounds = array<i64: 256, 128>}]} {
    %c0 = arith.constant 0 : index
    %c0_0 = arith.constant 0 : index
    %0 = vector.load %arg1[%c0, %c0_0] : memref<256x128xf32, #tpu.memory_space<vmem>>, vector<256x128xf32>
    %1 = arith.truncf %0 : vector<256x128xf32> to vector<256x128xbf16>
    %c0_1 = arith.constant 0 : index
    %c0_2 = arith.constant 0 : index
    %2 = vector.load %arg2[%c0_1, %c0_2] : memref<128x256xbf16, #tpu.memory_space<vmem>>, vector<128x256xbf16>
    %cst = arith.constant dense<0.000000e+00> : vector<256x256xf32>
    %3 = tpu.matmul %1, %2, %cst {dimension_numbers = #tpu.dot_dimension_numbers<[1], [0], [0], [1], [0, 0, 1, 1], [], []>} : vector<256x128xbf16>, vector<128x256xbf16>, vector<256x256xf32> -> vector<256x256xf32>
    %c0_3 = arith.constant 0 : index
    %c0_4 = arith.constant 0 : index
    %4 = vector.load %arg3[%c0_3, %c0_4] : memref<1x256xf32, #tpu.memory_space<vmem>>, vector<1x256xf32>
    %5 = vector.broadcast %4 : vector<1x256xf32> to vector<256x256xf32>
    %6 = arith.addf %3, %5 : vector<256x256xf32>
    %cst_5 = arith.constant 0.000000e+00 : f32
    %7 = vector.broadcast %cst_5 : f32 to vector<256x256xf32>
    %8 = arith.maximumf %6, %7 : vector<256x256xf32>
    %9 = arith.truncf %8 : vector<256x256xf32> to vector<256x256xbf16>
    %c0_6 = arith.constant 0 : index
    %c0_7 = arith.constant 0 : index
    %10 = vector.load %arg4[%c0_6, %c0_7] : memref<256x128xbf16, #tpu.memory_space<vmem>>, vector<256x128xbf16>
    %cst_8 = arith.constant dense<0.000000e+00> : vector<256x128xf32>
    %11 = tpu.matmul %9, %10, %cst_8 {dimension_numbers = #tpu.dot_dimension_numbers<[1], [0], [0], [1], [0, 0, 1, 1], [], []>} : vector<256x256xbf16>, vector<256x128xbf16>, vector<256x128xf32> -> vector<256x128xf32>
    %c0_9 = arith.constant 0 : index
    %c0_10 = arith.constant 0 : index
    %12 = vector.load %arg5[%c0_9, %c0_10] : memref<1x128xf32, #tpu.memory_space<vmem>>, vector<1x128xf32>
    %13 = vector.broadcast %12 : vector<1x128xf32> to vector<256x128xf32>
    %14 = arith.addf %11, %13 : vector<256x128xf32>
    %c0_11 = arith.constant 0 : index
    %c0_12 = arith.constant 0 : index
    %15 = vector.load %arg6[%c0_11, %c0_12] : memref<256x128xf32, #tpu.memory_space<vmem>>, vector<256x128xf32>
    tpu.vector_store %arg6[%c0_11, %c0_12], %14 {strides = array<i32>} : memref<256x128xf32, #tpu.memory_space<vmem>>, vector<256x128xf32>,
    return
  }
  func.func @transform_0(%arg0: i32) -> (i32, i32) {
    %c0_i32 = arith.constant 0 : i32
    %c0_i32_0 = arith.constant 0 : i32
    return %arg0, %c0_i32 : i32, i32
  }
  func.func @transform_1(%arg0: i32) -> (i32, i32) {
    %c0_i32 = arith.constant 0 : i32
    %c0_i32_0 = arith.constant 0 : i32
    %c0_i32_1 = arith.constant 0 : i32
    return %c0_i32, %c0_i32_0 : i32, i32
  }
  func.func @transform_2(%arg0: i32) -> (i32, i32) {
    %c0_i32 = arith.constant 0 : i32
    %c0_i32_0 = arith.constant 0 : i32
    %c0_i32_1 = arith.constant 0 : i32
    return %c0_i32, %c0_i32_0 : i32, i32
  }
  func.func @transform_3(%arg0: i32) -> (i32, i32) {
    %c0_i32 = arith.constant 0 : i32
    %c0_i32_0 = arith.constant 0 : i32
    %c0_i32_1 = arith.constant 0 : i32
    return %c0_i32, %c0_i32_0 : i32, i32
  }
  func.func @transform_4(%arg0: i32) -> (i32, i32) {
    %c0_i32 = arith.constant 0 : i32
    %c0_i32_0 = arith.constant 0 : i32
    %c0_i32_1 = arith.constant 0 : i32
    return %c0_i32, %c0_i32_0 : i32, i32
  }
  func.func @transform_5(%arg0: i32) -> (i32, i32) {
    %c0_i32 = arith.constant 0 : i32
    %c0_i32_0 = arith.constant 0 : i32
    return %arg0, %c0_i32 : i32, i32
  }
}

module attributes {stable_mosaic.version = 11 : i64} {
  func.func @_combined_kernel(%arg0: i32, %arg1: memref<256x128xf32, #tpu.memory_space<vmem>>, %arg2: memref<128x256xbf16, #tpu.memory_space<vmem>>, %arg3: memref<1x256xf32, #tpu.memory_space<vmem>>, %arg4: memref<256x128xbf16, #tpu.memory_space<vmem>>, %arg5: memref<1x128xf32, #tpu.memory_space<vmem>>, %arg6: memref<256x128xf32, #tpu.memory_space<vmem>>) attributes {dimension_semantics = [#tpu.dimension_semantics<parallel>], iteration_bounds = array<i64: 1>, scalar_prefetch = 0 : i64, scratch_operands = 0 : i64, tpu.core_type = #tpu.core_type<tc>, window_params = [{transform_indices = @transform_0, window_bounds = array<i64: 256, 128>}, {pipeline_mode = #tpu.pipeline_mode<synchronous>, transform_indices = @transform_1, window_bounds = array<i64: 128, 256>}, {pipeline_mode = #tpu.pipeline_mode<synchronous>, transform_indices = @transform_2, window_bounds = array<i64: 1, 256>}, {pipeline_mode = #tpu.pipeline_mode<synchronous>, transform_indices = @transform_3, window_bounds = array<i64: 256, 128>}, {pipeline_mode = #tpu.pipeline_mode<synchronous>, transform_indices = @transform_4, window_bounds = array<i64: 1, 128>}, {transform_indices = @transform_5, window_bounds = array<i64: 256, 128>}]} {
    %c0 = arith.constant 0 : index
    %c0_0 = arith.constant 0 : index
    %0 = vector.load %arg1[%c0, %c0_0] : memref<256x128xf32, #tpu.memory_space<vmem>>, vector<256x128xf32>
    %1 = arith.truncf %0 : vector<256x128xf32> to vector<256x128xbf16>
    %c0_1 = arith.constant 0 : index
    %c0_2 = arith.constant 0 : index
    %2 = vector.load %arg2[%c0_1, %c0_2] : memref<128x256xbf16, #tpu.memory_space<vmem>>, vector<128x256xbf16>
    %cst = arith.constant dense<0.000000e+00> : vector<256x256xf32>
    %3 = tpu.matmul %1, %2, %cst {dimension_numbers = #tpu.dot_dimension_numbers<[1], [0], [0], [1], [0, 0, 1, 1], [], []>} : vector<256x128xbf16>, vector<128x256xbf16>, vector<256x256xf32> -> vector<256x256xf32>
    %c0_3 = arith.constant 0 : index
    %c0_4 = arith.constant 0 : index
    %4 = vector.load %arg3[%c0_3, %c0_4] : memref<1x256xf32, #tpu.memory_space<vmem>>, vector<1x256xf32>
    %5 = vector.broadcast %4 : vector<1x256xf32> to vector<256x256xf32>
    %6 = arith.addf %3, %5 : vector<256x256xf32>
    %cst_5 = arith.constant 0.000000e+00 : f32
    %7 = vector.broadcast %cst_5 : f32 to vector<256x256xf32>
    %8 = arith.maximumf %6, %7 : vector<256x256xf32>
    %9 = arith.truncf %8 : vector<256x256xf32> to vector<256x256xbf16>
    %c0_6 = arith.constant 0 : index
    %c0_7 = arith.constant 0 : index
    %10 = vector.load %arg4[%c0_6, %c0_7] : memref<256x128xbf16, #tpu.memory_space<vmem>>, vector<256x128xbf16>
    %cst_8 = arith.constant dense<0.000000e+00> : vector<256x128xf32>
    %11 = tpu.matmul %9, %10, %cst_8 {dimension_numbers = #tpu.dot_dimension_numbers<[1], [0], [0], [1], [0, 0, 1, 1], [], []>} : vector<256x256xbf16>, vector<256x128xbf16>, vector<256x128xf32> -> vector<256x128xf32>
    %c0_9 = arith.constant 0 : index
    %c0_10 = arith.constant 0 : index
    %12 = vector.load %arg5[%c0_9, %c0_10] : memref<1x128xf32, #tpu.memory_space<vmem>>, vector<1x128xf32>
    %13 = vector.broadcast %12 : vector<1x128xf32> to vector<256x128xf32>
    %14 = arith.addf %11, %13 : vector<256x128xf32>
    %c0_11 = arith.constant 0 : index
    %c0_12 = arith.constant 0 : index
    %15 = vector.load %arg6[%c0_11, %c0_12] : memref<256x128xf32, #tpu.memory_space<vmem>>, vector<256x128xf32>
    tpu.vector_store %arg6[%c0_11, %c0_12], %14 {strides = array<i32>} : memref<256x128xf32, #tpu.memory_space<vmem>>, vector<256x128xf32>,
    return
  }
  func.func @transform_0(%arg0: i32) -> (i32, i32) {
    %c0_i32 = arith.constant 0 : i32
    %c0_i32_0 = arith.constant 0 : i32
    return %arg0, %c0_i32 : i32, i32
  }
  func.func @transform_1(%arg0: i32) -> (i32, i32) {
    %c0_i32 = arith.constant 0 : i32
    %c0_i32_0 = arith.constant 0 : i32
    %c0_i32_1 = arith.constant 0 : i32
    return %c0_i32, %c0_i32_0 : i32, i32
  }
  func.func @transform_2(%arg0: i32) -> (i32, i32) {
    %c0_i32 = arith.constant 0 : i32
    %c0_i32_0 = arith.constant 0 : i32
    %c0_i32_1 = arith.constant 0 : i32
    return %c0_i32, %c0_i32_0 : i32, i32
  }
  func.func @transform_3(%arg0: i32) -> (i32, i32) {
    %c0_i32 = arith.constant 0 : i32
    %c0_i32_0 = arith.constant 0 : i32
    %c0_i32_1 = arith.constant 0 : i32
    return %c0_i32, %c0_i32_0 : i32, i32
  }
  func.func @transform_4(%arg0: i32) -> (i32, i32) {
    %c0_i32 = arith.constant 0 : i32
    %c0_i32_0 = arith.constant 0 : i32
    %c0_i32_1 = arith.constant 0 : i32
    return %c0_i32, %c0_i32_0 : i32, i32
  }
  func.func @transform_5(%arg0: i32) -> (i32, i32) {
    %c0_i32 = arith.constant 0 : i32
    %c0_i32_0 = arith.constant 0 : i32
    return %arg0, %c0_i32 : i32, i32
  }
}

</mosaic_0001>

<bundles_post_ra>
// kernel: tpu_custom_call.1
= control target key start
LH: loop header
LB: loop body
LE: loop exit
PB: predicated region body
PF: predicated region fallthrough
CT: control target
= control target key end

     0   :  { %10 = vsyncpa [#allocation3], 0  ;;  %s1335_s0 = inlined_call_operand.hbm [shape: f32[256,128], index: 0, kind: input, shape index: {}]   ;;  %s1336_s1 = inlined_call_operand.hbm [shape: bf16[128,256], index: 1, kind: input, shape index: {}]   ;;  %s1337_s2 = inlined_call_operand.hbm [shape: f32[1,256], index: 2, kind: input, shape index: {}]   ;;  %s1338_s3 = inlined_call_operand.hbm [shape: bf16[256,128], index: 3, kind: input, shape index: {}]   ;;  %s1339_s4 = inlined_call_operand.vmem [shape: f32[1,128], index: 4, kind: input, shape index: {}]   ;;  %s1340_s5 = inlined_call_operand.hbm [shape: f32[256,128], index: 5, kind: output, shape index: {}]  }
   0x1   :  { %11 = vsyncpa [#allocation6], 0 }
   0x2   :  { %12 = vsyncpa [#allocation9], 0 }
   0x3   :  { %13 = vsyncpa [#allocation4], 0  ;;  %s31_s20 = sshll.u32 %s1336_s1, 4  ;;  %s1167_s21 = smov [#allocation5]   ;;  %s32_s20 = int_to_ptr.hbm [resolvable:$true] %s31_s20 }
   0x4   :  { %s33_s22 = sshll.u32 %s1167_s21, 4  ;;  %s18_s25 = sshll.u32 %s1335_s0, 4  ;;  %s34_s22 = int_to_ptr.vmem [resolvable:$true] %s33_s22  ;;  %s19_s25 = int_to_ptr.hbm [resolvable:$true] %s18_s25 }
   0x5   :  { %s1168_s26 = smov 128   ;;  %s1169_s27 = smov 8  }
   0x6   :  { %39 = dma.hbm_to_vmem [thread:$0]  %s32_s20, 2048, %s34_s22, [#allocation6], %s1168_s26, %s1168_s26, %s1169_s27  }
   0x7   :  { %s1170_s28 = smov [#allocation2]   ;;  %s45_s1 = sshll.u32 %s1337_s2, 4  ;;  %s46_s1 = int_to_ptr.hbm [resolvable:$true] %s45_s1 }
   0x8   :  { %s20_s29 = sshll.u32 %s1170_s28, 4  ;;  %s55_s8 = sshll.u32 %s1338_s3, 4  ;;  %s21_s29 = int_to_ptr.vmem [resolvable:$true] %s20_s29  ;;  %s56_s8 = int_to_ptr.hbm [resolvable:$true] %s55_s8 }
   0x9   :  { %26 = dma.hbm_to_vmem [thread:$0]  %s19_s25, 4096, %s21_s29, [#allocation3], %s1168_s26, %s1168_s26, %s1169_s27  }
   0xa   :  { %s1171_s9 = smov [#allocation7]   ;;  %s1172_s11 = smov [#allocation8]  }
   0xb   :  { %s47_s10 = sshll.u32 %s1171_s9, 4  ;;  %s57_s12 = sshll.u32 %s1172_s11, 4  ;;  %s48_s10 = int_to_ptr.vmem [resolvable:$true] %s47_s10  ;;  %s58_s12 = int_to_ptr.vmem [resolvable:$true] %s57_s12 }
   0xc   :  { %50 = dma.hbm_to_vmem [thread:$0]  %s46_s1, 32, %s48_s10, [#allocation6]  }
   0xd   :  { %s1173_s13 = smov 64   ;;  %s1174_s2 = smov 4  }
   0xe   :  { %63 = dma.hbm_to_vmem [thread:$0]  %s56_s8, 2048, %s58_s12, [#allocation9], %s1173_s13, %s1173_s13, %s1174_s2  }
   0xf   :  { %1159 = dma.done.wait [#allocation3], 4096  }
  0x10   :  { %1160 = vsyncadd [#allocation3], 4294963200 }
  0x11   :  { %1161 = dma.done.wait [#allocation6], 2080  }
  0x12   :  { %1162 = vsyncadd [#allocation6], 4294965216 }
  0x13   :  { %1163 = dma.done.wait [#allocation9], 2048  }
  0x14   :  { %1164 = vsyncadd [#allocation9], 4294965248  ;;  %v927_v0 = vld [vmem:[#allocation5 + $0x70] sm:$0xf]  ;;  %v1012_v1 = vld [vmem:[#allocation5 + $0x74] sm:$0xf0] }
  0x15   :  { %v1011_v2 = vld [vmem:[#allocation5 + $0x74] sm:$0xf]  ;;  %v928_v3 = vor.u32 %v1012_v1, %v927_v0  ;;  %v929_v4 = vld [vmem:[#allocation5 + $0x78] sm:$0xf0]  ;;  %v919_v5 = vld [vmem:[#allocation5 + $0x60] sm:$0xf] }
  0x16   :  { %v1010_v6 = vld [vmem:[#allocation5 + $0x64] sm:$0xf0]  ;;  %v932_v7 = vor.u32 %v1011_v2, %v929_v4  ;;  %v1009_v8 = vld [vmem:[#allocation5 + $0x64] sm:$0xf]  ;;  %v921_v9 = vld [vmem:[#allocation5 + $0x68] sm:$0xf0] }
  0x17   :  { %232 = vmatpush.bf16.msra.mxu0 %v928_v3  ;;  %v920_v10 = vor.u32 %v1010_v6, %v919_v5  ;;  %v924_v11 = vor.u32 %v1009_v8, %v921_v9  ;;  %v911_v12 = vld [vmem:[#allocation5 + $0x50] sm:$0xf]  ;;  %v1008_v13 = vld [vmem:[#allocation5 + $0x54] sm:$0xf0]  ;;  %v1007_v14 = vld [vmem:[#allocation5 + $0x54] sm:$0xf] }
  0x18   :  { %321 = vmatpush.bf16.msra.mxu1 %v932_v7  ;;  %v913_v15 = vld [vmem:[#allocation5 + $0x58] sm:$0xf0]  ;;  %v912_v16 = vor.u32 %v1008_v13, %v911_v12  ;;  %v903_v18 = vld [vmem:[#allocation5 + $0x40] sm:$0xf]  ;;  %v1006_v19 = vld [vmem:[#allocation5 + $0x44] sm:$0xf0] }
  0x19   :  { %v916_v17 = vor.u32 %v1007_v14, %v913_v15  ;;  %v1005_v20 = vld [vmem:[#allocation5 + $0x44] sm:$0xf]  ;;  %v905_v21 = vld [vmem:[#allocation5 + $0x48] sm:$0xf0]  ;;  %v904_v22 = vor.u32 %v1006_v19, %v903_v18  ;;  %v895_v24 = vld [vmem:[#allocation5 + $0x30] sm:$0xf] }
  0x1a   :  { %v908_v23 = vor.u32 %v1005_v20, %v905_v21  ;;  %v1004_v25 = vld [vmem:[#allocation5 + $0x34] sm:$0xf0]  ;;  %v1003_v26 = vld [vmem:[#allocation5 + $0x34] sm:$0xf]  ;;  %v897_v27 = vld [vmem:[#allocation5 + $0x38] sm:$0xf0] }
  0x1b   :  { %233 = vmatpush.bf16.msra.mxu0 %v920_v10  ;;  %v896_v28 = vor.u32 %v1004_v25, %v895_v24  ;;  %v900_v29 = vor.u32 %v1003_v26, %v897_v27  ;;  %v887_v30 = vld [vmem:[#allocation5 + $0x20] sm:$0xf]  ;;  %v1002_v31 = vld [vmem:[#allocation5 + $0x24] sm:$0xf0]  ;;  %v1001_v32 = vld [vmem:[#allocation5 + $0x24] sm:$0xf] }
  0x1c   :  { %322 = vmatpush.bf16.msra.mxu1 %v924_v11  ;;  %v889_v33 = vld [vmem:[#allocation5 + $0x28] sm:$0xf0]  ;;  %v888_v34 = vor.u32 %v1002_v31, %v887_v30  ;;  %v879_v36 = vld [vmem:[#allocation5 + $0x10] sm:$0xf]  ;;  %v1000_v37 = vld [vmem:[#allocation5 + $0x14] sm:$0xf0] }
  0x1d   :  { %v892_v35 = vor.u32 %v1001_v32, %v889_v33  ;;  %v999_v38 = vld [vmem:[#allocation5 + $0x14] sm:$0xf]  ;;  %v881_v39 = vld [vmem:[#allocation5 + $0x18] sm:$0xf0]  ;;  %v880_v40 = vor.u32 %v1000_v37, %v879_v36  ;;  %v871_v42 = vld [vmem:[#allocation5] sm:$0xf] }
  0x1e   :  { %v884_v41 = vor.u32 %v999_v38, %v881_v39  ;;  %v998_v43 = vld [vmem:[#allocation5 + $0x4] sm:$0xf0]  ;;  %v997_v44 = vld [vmem:[#allocation5 + $0x4] sm:$0xf]  ;;  %v873_v45 = vld [vmem:[#allocation5 + $0x8] sm:$0xf0] }
  0x1f   :  { %234 = vmatpush.bf16.msra.mxu0 %v912_v16  ;;  %v872_v46 = vor.u32 %v998_v43, %v871_v42  ;;  %v82_v47 = vld [vmem:[#allocation2] sm:$0xff]  ;;  %v83_v48 = vld [vmem:[#allocation2 + $0x8] sm:$0xff]  ;;  %v876_v49 = vor.u32 %v997_v44, %v873_v45  ;;  %v84_v51 = vld [vmem:[#allocation2 + $0x10] sm:$0xff]  ;;  %s854_s18 = sshll.u32 %s1340_s5, 4  ;;  %s855_s18 = int_to_ptr.hbm [resolvable:$true] %s854_s18 }
  0x20   :  { %323 = vmatpush.bf16.msra.mxu1 %v916_v17  ;;  %v114_v50 = vpack.c.bf16 %v83_v48, %v82_v47  ;;  %v85_v52 = vld [vmem:[#allocation2 + $0x18] sm:$0xff]  ;;  %v86_v54 = vld [vmem:[#allocation2 + $0x20] sm:$0xff]  ;;  %v87_v55 = vld [vmem:[#allocation2 + $0x28] sm:$0xff] }
  0x21   :  { %v115_v53 = vpack.c.bf16 %v85_v52, %v84_v51  ;;  %v116_v56 = vpack.c.bf16 %v87_v55, %v86_v54  ;;  %v88_v57 = vld [vmem:[#allocation2 + $0x30] sm:$0xff]  ;;  %v89_v58 = vld [vmem:[#allocation2 + $0x38] sm:$0xff]  ;;  %v90_v60 = vld [vmem:[#allocation2 + $0x40] sm:$0xff] }
  0x22   :  { %v117_v59 = vpack.c.bf16 %v89_v58, %v88_v57  ;;  %v91_v61 = vld [vmem:[#allocation2 + $0x48] sm:$0xff]  ;;  %v1020_v63 = vld [vmem:[#allocation8 + $0x38] sm:$0xff]  ;;  %v92_v1 = vld [vmem:[#allocation2 + $0x50] sm:$0xff] }
  0x23   :  { %235 = vmatpush.bf16.msra.mxu0 %v904_v22  ;;  %v118_v62 = vpack.c.bf16 %v91_v61, %v90_v60  ;;  %v1028_v0 = vld [vmem:[#allocation8 + $0x78] sm:$0xff]  ;;  %638 = vmatpush.bf16.msra.mxu2 %v1020_v63  ;;  %v1019_v4 = vld [vmem:[#allocation8 + $0x30] sm:$0xff]  ;;  %v1018_v6 = vld [vmem:[#allocation8 + $0x28] sm:$0xff] }
  0x24   :  { %324 = vmatpush.bf16.msra.mxu1 %v908_v23  ;;  %727 = vmatpush.bf16.msra.mxu3 %v1028_v0  ;;  %v93_v2 = vld [vmem:[#allocation2 + $0x58] sm:$0xff]  ;;  %v1026_v7 = vld [vmem:[#allocation8 + $0x68] sm:$0xff]  ;;  %v1017_v8 = vld [vmem:[#allocation8 + $0x20] sm:$0xff] }
  0x25   :  { %v119_v3 = vpack.c.bf16 %v93_v2, %v92_v1  ;;  %v1027_v5 = vld [vmem:[#allocation8 + $0x70] sm:$0xff]  ;;  %v1025_v9 = vld [vmem:[#allocation8 + $0x60] sm:$0xff]  ;;  %v1016_v13 = vld [vmem:[#allocation8 + $0x18] sm:$0xff] }
  0x26   :  { %v94_v10 = vld [vmem:[#allocation2 + $0x60] sm:$0xff]  ;;  %v95_v11 = vld [vmem:[#allocation2 + $0x68] sm:$0xff]  ;;  %v1015_v15 = vld [vmem:[#allocation8 + $0x10] sm:$0xff] }
  0x27   :  { %236 = vmatpush.bf16.msra.mxu0 %v896_v28  ;;  %639 = vmatpush.bf16.msra.mxu2 %v1019_v4  ;;  %v120_v12 = vpack.c.bf16 %v95_v11, %v94_v10  ;;  %v1024_v14 = vld [vmem:[#allocation8 + $0x58] sm:$0xff]  ;;  %v1023_v16 = vld [vmem:[#allocation8 + $0x50] sm:$0xff]  ;;  %v1014_v17 = vld [vmem:[#allocation8 + $0x8] sm:$0xff] }
  0x28   :  { %325 = vmatpush.bf16.msra.mxu1 %v900_v29  ;;  %728 = vmatpush.bf16.msra.mxu3 %v1027_v5  ;;  %v1022_v18 = vld [vmem:[#allocation8 + $0x48] sm:$0xff]  ;;  %v1013_v19 = vld [vmem:[#allocation8] sm:$0xff]  ;;  %v97_v22 = vld [vmem:[#allocation2 + $0x78] sm:$0xff] }
  0x29   :  { %v1021_v20 = vld [vmem:[#allocation8 + $0x40] sm:$0xff]  ;;  %v96_v21 = vld [vmem:[#allocation2 + $0x70] sm:$0xff]  ;;  %v146_v27 = vld [vmem:[#allocation7] sm:$0x3] }
  0x2a   :  { %v121_v23 = vpack.c.bf16 %v97_v22, %v96_v21  ;;  %v98_v24 = vld [vmem:[#allocation2 + $0x80] sm:$0xff]  ;;  %v99_v25 = vld [vmem:[#allocation2 + $0x88] sm:$0xff]  ;;  %v1224_v30 = vperm.slane %v146_v27, 0  ;;  %v1226_v31 = vperm.slane %v146_v27, 1  ;;  %v100_v42 = vld [vmem:[#allocation2 + $0x90] sm:$0xff] }
  0x2b   :  { %237 = vmatpush.bf16.msra.mxu0 %v888_v34  ;;  %640 = vmatpush.bf16.msra.mxu2 %v1018_v6  ;;  %v122_v26 = vpack.c.bf16 %v99_v25, %v98_v24  ;;  %v101_v43 = vld [vmem:[#allocation2 + $0x98] sm:$0xff]  ;;  %v103_v60 = vld [vmem:[#allocation2 + $0xa8] sm:$0xff] }
  0x2c   :  { %326 = vmatpush.bf16.msra.mxu1 %v892_v35  ;;  %729 = vmatpush.bf16.msra.mxu3 %v1026_v7 }
  0x2f   :  { %238 = vmatpush.bf16.msra.mxu0 %v880_v40  ;;  %641 = vmatpush.bf16.msra.mxu2 %v1017_v8 }
  0x30   :  { %327 = vmatpush.bf16.msra.mxu1 %v884_v41  ;;  %730 = vmatpush.bf16.msra.mxu3 %v1025_v9 }
  0x33   :  { %239 = vmatpush.bf16.msra.mxu0 %v872_v46  ;;  %642 = vmatpush.bf16.msra.mxu2 %v1016_v13  ;;  %v123_v46 = vpack.c.bf16 %v101_v43, %v100_v42  ;;  %v105_v13 = vld [vmem:[#allocation2 + $0xb8] sm:$0xff] }
  0x34   :  { %328 = vmatpush.bf16.msra.mxu1 %v876_v49  ;;  %731 = vmatpush.bf16.msra.mxu3 %v1024_v14 }
  0x36   :  { %240 = vmatmul.bf16.vlgmr.msra.gmra.mxu0 %v114_v50 }
  0x37   :  { %329 = vmatmul.bf16.vlgmr.msra.gmra.mxu1 %v114_v50  ;;  %643 = vmatpush.bf16.msra.mxu2 %v1015_v15 }
  0x38   :  { %732 = vmatpush.bf16.msra.mxu3 %v1023_v16 }
  0x3b   :  { %644 = vmatpush.bf16.msra.mxu2 %v1014_v17 }
  0x3c   :  { %733 = vmatpush.bf16.msra.mxu3 %v1022_v18 }
  0x3f   :  { %645 = vmatpush.bf16.msra.mxu2 %v1013_v19 }
  0x40   :  { %734 = vmatpush.bf16.msra.mxu3 %v1021_v20 }
  0x46   :  { %245 = vmatmul.bf16.gmra.mxu0 %v115_v53 }
  0x47   :  { %334 = vmatmul.bf16.gmra.mxu1 %v115_v53 }
  0x56   :  { %250 = vmatmul.bf16.gmra.mxu0 %v116_v56 }
  0x57   :  { %339 = vmatmul.bf16.gmra.mxu1 %v116_v56 }
  0x66   :  { %255 = vmatmul.bf16.gmra.mxu0 %v117_v59 }
  0x67   :  { %344 = vmatmul.bf16.gmra.mxu1 %v117_v59  ;;  %v102_v59 = vld [vmem:[#allocation2 + $0xa0] sm:$0xff] }
  0x68   :  { %v124_v63 = vpack.c.bf16 %v103_v60, %v102_v59 }
  0x76   :  { %260 = vmatmul.bf16.gmra.mxu0 %v118_v62 }
  0x77   :  { %349 = vmatmul.bf16.gmra.mxu1 %v118_v62 }
  0x86   :  { %265 = vmatmul.bf16.gmra.mxu0 %v119_v3 }
  0x87   :  { %354 = vmatmul.bf16.gmra.mxu1 %v119_v3 }
  0x96   :  { %270 = vmatmul.bf16.gmra.mxu0 %v120_v12 }
  0x97   :  { %359 = vmatmul.bf16.gmra.mxu1 %v120_v12  ;;  %v104_v12 = vld [vmem:[#allocation2 + $0xb0] sm:$0xff] }
  0x98   :  { %v125_v16 = vpack.c.bf16 %v105_v13, %v104_v12 }
  0xa6   :  { %275 = vmatmul.bf16.gmra.mxu0 %v121_v23 }
  0xa7   :  { %364 = vmatmul.bf16.gmra.mxu1 %v121_v23 }
  0xb3   :  { %v241_v28 = vpop.f32.mrf.mxu0 }
  0xb4   :  { %v330_v29 = vpop.f32.mrf.mxu1  ;;  %v242_v32 = vadd.f32 %v241_v28, %v1224_v30 }
  0xb5   :  { %v331_v33 = vadd.f32 %v330_v29, %v1226_v31  ;;  %v106_v29 = vld [vmem:[#allocation2 + $0xc0] sm:$0xff] }
  0xb6   :  { %280 = vmatmul.bf16.gmra.mxu0 %v122_v26  ;;  %v410_v38 = vmax.f32 %v242_v32, 0.0  ;;  %v107_v32 = vld [vmem:[#allocation2 + $0xc8] sm:$0xff] }
  0xb7   :  { %369 = vmatmul.bf16.gmra.mxu1 %v122_v26  ;;  %v411_v40 = vmax.f32 %v331_v33, 0.0 }
  0xbb   :  { %v243_v34 = vpop.f32.mrf.mxu0 }
  0xbc   :  { %v244_v35 = vadd.f32 %v243_v34, %v1224_v30  ;;  %v332_v36 = vpop.f32.mrf.mxu1 }
  0xbd   :  { %v333_v37 = vadd.f32 %v332_v36, %v1226_v31 }
  0xbe   :  { %v412_v39 = vmax.f32 %v244_v35, 0.0  ;;  %v126_v35 = vpack.c.bf16 %v107_v32, %v106_v29 }
  0xbf   :  { %v413_v41 = vmax.f32 %v333_v37, 0.0 }
  0xc0   :  { %v474_v44 = vpack.c.bf16 %v412_v39, %v410_v38 }
  0xc1   :  { %v475_v45 = vpack.c.bf16 %v413_v41, %v411_v40 }
  0xc2   :  { %646 = vmatmul.bf16.vlgmr.msra.gmra.mxu2 %v474_v44 }
  0xc3   :  { %735 = vmatmul.bf16.vlgmr.msra.gmra.mxu3 %v475_v45  ;;  %v246_v47 = vpop.f32.mrf.mxu0 }
  0xc4   :  { %v335_v48 = vpop.f32.mrf.mxu1  ;;  %v247_v49 = vadd.f32 %v246_v47, %v1224_v30 }
  0xc5   :  { %v336_v50 = vadd.f32 %v335_v48, %v1226_v31  ;;  %v108_v48 = vld [vmem:[#allocation2 + $0xd0] sm:$0xff] }
  0xc6   :  { %285 = vmatmul.bf16.gmra.mxu0 %v123_v46  ;;  %v414_v55 = vmax.f32 %v247_v49, 0.0  ;;  %v109_v49 = vld [vmem:[#allocation2 + $0xd8] sm:$0xff] }
  0xc7   :  { %374 = vmatmul.bf16.gmra.mxu1 %v123_v46  ;;  %v415_v57 = vmax.f32 %v336_v50, 0.0 }
  0xcb   :  { %v248_v51 = vpop.f32.mrf.mxu0 }
  0xcc   :  { %v249_v52 = vadd.f32 %v248_v51, %v1224_v30  ;;  %v337_v53 = vpop.f32.mrf.mxu1 }
  0xcd   :  { %v338_v54 = vadd.f32 %v337_v53, %v1226_v31 }
  0xce   :  { %v416_v56 = vmax.f32 %v249_v52, 0.0  ;;  %v127_v52 = vpack.c.bf16 %v109_v49, %v108_v48 }
  0xcf   :  { %v417_v58 = vmax.f32 %v338_v54, 0.0 }
  0xd0   :  { %v476_v61 = vpack.c.bf16 %v416_v56, %v414_v55 }
  0xd1   :  { %v477_v62 = vpack.c.bf16 %v417_v58, %v415_v57 }
  0xd2   :  { %651 = vmatmul.bf16.gmra.mxu2 %v476_v61 }
  0xd3   :  { %740 = vmatmul.bf16.gmra.mxu3 %v477_v62  ;;  %v251_v0 = vpop.f32.mrf.mxu0 }
  0xd4   :  { %v340_v1 = vpop.f32.mrf.mxu1  ;;  %v252_v2 = vadd.f32 %v251_v0, %v1224_v30 }
  0xd5   :  { %v341_v3 = vadd.f32 %v340_v1, %v1226_v31  ;;  %v110_v1 = vld [vmem:[#allocation2 + $0xe0] sm:$0xff] }
  0xd6   :  { %290 = vmatmul.bf16.gmra.mxu0 %v124_v63  ;;  %v418_v8 = vmax.f32 %v252_v2, 0.0  ;;  %v111_v2 = vld [vmem:[#allocation2 + $0xe8] sm:$0xff] }
  0xd7   :  { %379 = vmatmul.bf16.gmra.mxu1 %v124_v63  ;;  %v419_v10 = vmax.f32 %v341_v3, 0.0 }
  0xdb   :  { %v253_v4 = vpop.f32.mrf.mxu0 }
  0xdc   :  { %v254_v5 = vadd.f32 %v253_v4, %v1224_v30  ;;  %v342_v6 = vpop.f32.mrf.mxu1 }
  0xdd   :  { %v343_v7 = vadd.f32 %v342_v6, %v1226_v31 }
  0xde   :  { %v420_v9 = vmax.f32 %v254_v5, 0.0  ;;  %v128_v5 = vpack.c.bf16 %v111_v2, %v110_v1 }
  0xdf   :  { %v421_v11 = vmax.f32 %v343_v7, 0.0 }
  0xe0   :  { %v478_v14 = vpack.c.bf16 %v420_v9, %v418_v8 }
  0xe1   :  { %v479_v15 = vpack.c.bf16 %v421_v11, %v419_v10 }
  0xe2   :  { %656 = vmatmul.bf16.gmra.mxu2 %v478_v14 }
  0xe3   :  { %745 = vmatmul.bf16.gmra.mxu3 %v479_v15  ;;  %v256_v17 = vpop.f32.mrf.mxu0 }
  0xe4   :  { %v345_v18 = vpop.f32.mrf.mxu1  ;;  %v257_v19 = vadd.f32 %v256_v17, %v1224_v30 }
  0xe5   :  { %v346_v20 = vadd.f32 %v345_v18, %v1226_v31  ;;  %v112_v18 = vld [vmem:[#allocation2 + $0xf0] sm:$0xff] }
  0xe6   :  { %295 = vmatmul.bf16.gmra.mxu0 %v125_v16  ;;  %v422_v25 = vmax.f32 %v257_v19, 0.0  ;;  %v113_v19 = vld [vmem:[#allocation2 + $0xf8] sm:$0xff] }
  0xe7   :  { %384 = vmatmul.bf16.gmra.mxu1 %v125_v16  ;;  %v423_v27 = vmax.f32 %v346_v20, 0.0 }
  0xeb   :  { %v258_v21 = vpop.f32.mrf.mxu0 }
  0xec   :  { %v259_v22 = vadd.f32 %v258_v21, %v1224_v30  ;;  %v347_v23 = vpop.f32.mrf.mxu1 }
  0xed   :  { %v348_v24 = vadd.f32 %v347_v23, %v1226_v31 }
  0xee   :  { %v424_v26 = vmax.f32 %v259_v22, 0.0  ;;  %v129_v22 = vpack.c.bf16 %v113_v19, %v112_v18 }
  0xef   :  { %v425_v28 = vmax.f32 %v348_v24, 0.0 }
  0xf0   :  { %v480_v33 = vpack.c.bf16 %v424_v26, %v422_v25 }
  0xf1   :  { %v481_v34 = vpack.c.bf16 %v425_v28, %v423_v27 }
  0xf2   :  { %661 = vmatmul.bf16.gmra.mxu2 %v480_v33 }
  0xf3   :  { %750 = vmatmul.bf16.gmra.mxu3 %v481_v34  ;;  %v261_v36 = vpop.f32.mrf.mxu0 }
  0xf4   :  { %v350_v37 = vpop.f32.mrf.mxu1  ;;  %v262_v38 = vadd.f32 %v261_v36, %v1224_v30 }
  0xf5   :  { %v351_v39 = vadd.f32 %v350_v37, %v1226_v31 }
  0xf6   :  { %300 = vmatmul.bf16.gmra.mxu0 %v126_v35  ;;  %v426_v44 = vmax.f32 %v262_v38, 0.0 }
  0xf7   :  { %389 = vmatmul.bf16.gmra.mxu1 %v126_v35  ;;  %v427_v46 = vmax.f32 %v351_v39, 0.0 }
  0xfb   :  { %v263_v40 = vpop.f32.mrf.mxu0 }
  0xfc   :  { %v264_v41 = vadd.f32 %v263_v40, %v1224_v30  ;;  %v352_v42 = vpop.f32.mrf.mxu1 }
  0xfd   :  { %v353_v43 = vadd.f32 %v352_v42, %v1226_v31 }
  0xfe   :  { %v428_v45 = vmax.f32 %v264_v41, 0.0 }
  0xff   :  { %v429_v47 = vmax.f32 %v353_v43, 0.0 }
 0x100   :  { %v482_v50 = vpack.c.bf16 %v428_v45, %v426_v44 }
 0x101   :  { %v483_v51 = vpack.c.bf16 %v429_v47, %v427_v46 }
 0x102   :  { %666 = vmatmul.bf16.gmra.mxu2 %v482_v50 }
 0x103   :  { %755 = vmatmul.bf16.gmra.mxu3 %v483_v51  ;;  %v266_v53 = vpop.f32.mrf.mxu0 }
 0x104   :  { %v355_v54 = vpop.f32.mrf.mxu1  ;;  %v267_v55 = vadd.f32 %v266_v53, %v1224_v30  ;;  %v1267_v53 = vld [vmem:[%s1339_s4] ss:$0 sm:$0xff]  ;;  %s1175_s4 = smov [#allocation10]  }
 0x105   :  { %v356_v56 = vadd.f32 %v355_v54, %v1226_v31  ;;  %s852_s15 = sshll.u32 %s1175_s4, 4  ;;  %s853_s15 = int_to_ptr.vmem [resolvable:$true] %s852_s15 }
 0x106   :  { %305 = vmatmul.bf16.gmra.mxu0 %v127_v52  ;;  %v430_v61 = vmax.f32 %v267_v55, 0.0 }
 0x107   :  { %394 = vmatmul.bf16.gmra.mxu1 %v127_v52  ;;  %v431_v63 = vmax.f32 %v356_v56, 0.0 }
 0x10b   :  { %v268_v57 = vpop.f32.mrf.mxu0 }
 0x10c   :  { %v269_v58 = vadd.f32 %v268_v57, %v1224_v30  ;;  %v357_v59 = vpop.f32.mrf.mxu1 }
 0x10d   :  { %v358_v60 = vadd.f32 %v357_v59, %v1226_v31 }
 0x10e   :  { %v432_v62 = vmax.f32 %v269_v58, 0.0 }
 0x10f   :  { %v433_v0 = vmax.f32 %v358_v60, 0.0 }
 0x110   :  { %v484_v3 = vpack.c.bf16 %v432_v62, %v430_v61 }
 0x111   :  { %v485_v4 = vpack.c.bf16 %v433_v0, %v431_v63 }
 0x112   :  { %671 = vmatmul.bf16.gmra.mxu2 %v484_v3 }
 0x113   :  { %760 = vmatmul.bf16.gmra.mxu3 %v485_v4  ;;  %v271_v6 = vpop.f32.mrf.mxu0 }
 0x114   :  { %v360_v7 = vpop.f32.mrf.mxu1  ;;  %v272_v8 = vadd.f32 %v271_v6, %v1224_v30 }
 0x115   :  { %v361_v9 = vadd.f32 %v360_v7, %v1226_v31 }
 0x116   :  { %310 = vmatmul.bf16.gmra.mxu0 %v128_v5  ;;  %v434_v14 = vmax.f32 %v272_v8, 0.0 }
 0x117   :  { %399 = vmatmul.bf16.gmra.mxu1 %v128_v5  ;;  %v435_v16 = vmax.f32 %v361_v9, 0.0 }
 0x11b   :  { %v273_v10 = vpop.f32.mrf.mxu0 }
 0x11c   :  { %v274_v11 = vadd.f32 %v273_v10, %v1224_v30  ;;  %v362_v12 = vpop.f32.mrf.mxu1 }
 0x11d   :  { %v363_v13 = vadd.f32 %v362_v12, %v1226_v31 }
 0x11e   :  { %v436_v15 = vmax.f32 %v274_v11, 0.0 }
 0x11f   :  { %v437_v17 = vmax.f32 %v363_v13, 0.0 }
 0x120   :  { %v486_v20 = vpack.c.bf16 %v436_v15, %v434_v14 }
 0x121   :  { %v487_v21 = vpack.c.bf16 %v437_v17, %v435_v16 }
 0x122   :  { %676 = vmatmul.bf16.gmra.mxu2 %v486_v20 }
 0x123   :  { %765 = vmatmul.bf16.gmra.mxu3 %v487_v21  ;;  %v276_v23 = vpop.f32.mrf.mxu0 }
 0x124   :  { %v365_v24 = vpop.f32.mrf.mxu1  ;;  %v277_v25 = vadd.f32 %v276_v23, %v1224_v30 }
 0x125   :  { %v366_v26 = vadd.f32 %v365_v24, %v1226_v31 }
 0x126   :  { %315 = vmatmul.bf16.gmra.mxu0 %v129_v22  ;;  %v438_v33 = vmax.f32 %v277_v25, 0.0 }
 0x127   :  { %404 = vmatmul.bf16.gmra.mxu1 %v129_v22  ;;  %v439_v35 = vmax.f32 %v366_v26, 0.0 }
 0x12b   :  { %v278_v27 = vpop.f32.mrf.mxu0 }
 0x12c   :  { %v279_v28 = vadd.f32 %v278_v27, %v1224_v30  ;;  %v367_v29 = vpop.f32.mrf.mxu1 }
 0x12d   :  { %v368_v32 = vadd.f32 %v367_v29, %v1226_v31 }
 0x12e   :  { %v440_v34 = vmax.f32 %v279_v28, 0.0 }
 0x12f   :  { %v441_v36 = vmax.f32 %v368_v32, 0.0 }
 0x130   :  { %v488_v37 = vpack.c.bf16 %v440_v34, %v438_v33 }
 0x131   :  { %v489_v38 = vpack.c.bf16 %v441_v36, %v439_v35 }
 0x132   :  { %681 = vmatmul.bf16.gmra.mxu2 %v488_v37 }
 0x133   :  { %770 = vmatmul.bf16.gmra.mxu3 %v489_v38  ;;  %v281_v39 = vpop.f32.mrf.mxu0 }
 0x134   :  { %v370_v40 = vpop.f32.mrf.mxu1  ;;  %v282_v41 = vadd.f32 %v281_v39, %v1224_v30 }
 0x135   :  { %v371_v42 = vadd.f32 %v370_v40, %v1226_v31 }
 0x136   :  { %v442_v47 = vmax.f32 %v282_v41, 0.0 }
 0x137   :  { %v443_v49 = vmax.f32 %v371_v42, 0.0 }
 0x13b   :  { %v283_v43 = vpop.f32.mrf.mxu0 }
 0x13c   :  { %v284_v44 = vadd.f32 %v283_v43, %v1224_v30  ;;  %v372_v45 = vpop.f32.mrf.mxu1 }
 0x13d   :  { %v373_v46 = vadd.f32 %v372_v45, %v1226_v31 }
 0x13e   :  { %v444_v48 = vmax.f32 %v284_v44, 0.0 }
 0x13f   :  { %v445_v50 = vmax.f32 %v373_v46, 0.0 }
 0x140   :  { %v490_v51 = vpack.c.bf16 %v444_v48, %v442_v47 }
 0x141   :  { %v491_v52 = vpack.c.bf16 %v445_v50, %v443_v49 }
 0x142   :  { %686 = vmatmul.bf16.gmra.mxu2 %v490_v51 }
 0x143   :  { %775 = vmatmul.bf16.gmra.mxu3 %v491_v52  ;;  %v286_v54 = vpop.f32.mrf.mxu0 }
 0x144   :  { %v375_v55 = vpop.f32.mrf.mxu1  ;;  %v287_v60 = vadd.f32 %v286_v54, %v1224_v30 }
 0x145   :  { %v647_v56 = vpop.f32.mrf.mxu2  ;;  %v376_v61 = vadd.f32 %v375_v55, %v1226_v31 }
 0x146   :  { %v648_v57 = vadd.f32 %v1267_v53, %v647_v56  ;;  %v736_v58 = vpop.f32.mrf.mxu3  ;;  %v446_v3 = vmax.f32 %v287_v60, 0.0 }
 0x147   :  { %v447_v7 = vmax.f32 %v376_v61, 0.0 }
 0x148   :  { %v737_v59 = vadd.f32 %v736_v58, %v648_v57 }
 0x14a   :  { %816 = vst [vmem:[#allocation10] sm:$0xff] %v737_v59 }
 0x14b   :  { %v288_v62 = vpop.f32.mrf.mxu0 }
 0x14c   :  { %v289_v63 = vadd.f32 %v288_v62, %v1224_v30  ;;  %v377_v0 = vpop.f32.mrf.mxu1 }
 0x14d   :  { %v378_v1 = vadd.f32 %v377_v0, %v1226_v31  ;;  %v649_v2 = vpop.f32.mrf.mxu2 }
 0x14e   :  { %v448_v4 = vmax.f32 %v289_v63, 0.0  ;;  %v650_v5 = vadd.f32 %v1267_v53, %v649_v2  ;;  %v738_v6 = vpop.f32.mrf.mxu3 }
 0x14f   :  { %v449_v8 = vmax.f32 %v378_v1, 0.0 }
 0x150   :  { %v739_v9 = vadd.f32 %v738_v6, %v650_v5  ;;  %v492_v10 = vpack.c.bf16 %v448_v4, %v446_v3 }
 0x151   :  { %v493_v11 = vpack.c.bf16 %v449_v8, %v447_v7 }
 0x152   :  { %817 = vst [vmem:[#allocation10 + $0x8] sm:$0xff] %v739_v9  ;;  %691 = vmatmul.bf16.gmra.mxu2 %v492_v10 }
 0x153   :  { %780 = vmatmul.bf16.gmra.mxu3 %v493_v11  ;;  %v291_v12 = vpop.f32.mrf.mxu0 }
 0x154   :  { %v380_v13 = vpop.f32.mrf.mxu1  ;;  %v292_v18 = vadd.f32 %v291_v12, %v1224_v30 }
 0x155   :  { %v652_v14 = vpop.f32.mrf.mxu2  ;;  %v381_v19 = vadd.f32 %v380_v13, %v1226_v31 }
 0x156   :  { %v653_v15 = vadd.f32 %v1267_v53, %v652_v14  ;;  %v741_v16 = vpop.f32.mrf.mxu3  ;;  %v450_v25 = vmax.f32 %v292_v18, 0.0 }
 0x157   :  { %v451_v29 = vmax.f32 %v381_v19, 0.0 }
 0x158   :  { %v742_v17 = vadd.f32 %v741_v16, %v653_v15 }
 0x15a   :  { %818 = vst [vmem:[#allocation10 + $0x10] sm:$0xff] %v742_v17 }
 0x15b   :  { %v293_v20 = vpop.f32.mrf.mxu0 }
 0x15c   :  { %v294_v21 = vadd.f32 %v293_v20, %v1224_v30  ;;  %v382_v22 = vpop.f32.mrf.mxu1 }
 0x15d   :  { %v383_v23 = vadd.f32 %v382_v22, %v1226_v31  ;;  %v654_v24 = vpop.f32.mrf.mxu2 }
 0x15e   :  { %v452_v26 = vmax.f32 %v294_v21, 0.0  ;;  %v655_v27 = vadd.f32 %v1267_v53, %v654_v24  ;;  %v743_v28 = vpop.f32.mrf.mxu3 }
 0x15f   :  { %v453_v32 = vmax.f32 %v383_v23, 0.0 }
 0x160   :  { %v744_v33 = vadd.f32 %v743_v28, %v655_v27  ;;  %v494_v34 = vpack.c.bf16 %v452_v26, %v450_v25 }
 0x161   :  { %v495_v35 = vpack.c.bf16 %v453_v32, %v451_v29 }
 0x162   :  { %819 = vst [vmem:[#allocation10 + $0x18] sm:$0xff] %v744_v33  ;;  %696 = vmatmul.bf16.gmra.mxu2 %v494_v34 }
 0x163   :  { %785 = vmatmul.bf16.gmra.mxu3 %v495_v35  ;;  %v296_v36 = vpop.f32.mrf.mxu0 }
 0x164   :  { %v385_v37 = vpop.f32.mrf.mxu1  ;;  %v297_v42 = vadd.f32 %v296_v36, %v1224_v30 }
 0x165   :  { %v657_v38 = vpop.f32.mrf.mxu2  ;;  %v386_v43 = vadd.f32 %v385_v37, %v1226_v31 }
 0x166   :  { %v658_v39 = vadd.f32 %v1267_v53, %v657_v38  ;;  %v746_v40 = vpop.f32.mrf.mxu3  ;;  %v454_v49 = vmax.f32 %v297_v42, 0.0 }
 0x167   :  { %v455_v54 = vmax.f32 %v386_v43, 0.0 }
 0x168   :  { %v747_v41 = vadd.f32 %v746_v40, %v658_v39 }
 0x16a   :  { %820 = vst [vmem:[#allocation10 + $0x20] sm:$0xff] %v747_v41 }
 0x16b   :  { %v298_v44 = vpop.f32.mrf.mxu0 }
 0x16c   :  { %v299_v45 = vadd.f32 %v298_v44, %v1224_v30  ;;  %v387_v46 = vpop.f32.mrf.mxu1 }
 0x16d   :  { %v388_v47 = vadd.f32 %v387_v46, %v1226_v31  ;;  %v659_v48 = vpop.f32.mrf.mxu2 }
 0x16e   :  { %v456_v50 = vmax.f32 %v299_v45, 0.0  ;;  %v660_v51 = vadd.f32 %v1267_v53, %v659_v48  ;;  %v748_v52 = vpop.f32.mrf.mxu3 }
 0x16f   :  { %v457_v55 = vmax.f32 %v388_v47, 0.0 }
 0x170   :  { %v749_v56 = vadd.f32 %v748_v52, %v660_v51  ;;  %v496_v57 = vpack.c.bf16 %v456_v50, %v454_v49 }
 0x171   :  { %v497_v58 = vpack.c.bf16 %v457_v55, %v455_v54 }
 0x172   :  { %821 = vst [vmem:[#allocation10 + $0x28] sm:$0xff] %v749_v56  ;;  %701 = vmatmul.bf16.gmra.mxu2 %v496_v57 }
 0x173   :  { %790 = vmatmul.bf16.gmra.mxu3 %v497_v58  ;;  %v301_v59 = vpop.f32.mrf.mxu0 }
 0x174   :  { %v390_v60 = vpop.f32.mrf.mxu1  ;;  %v302_v1 = vadd.f32 %v301_v59, %v1224_v30 }
 0x175   :  { %v662_v61 = vpop.f32.mrf.mxu2  ;;  %v391_v2 = vadd.f32 %v390_v60, %v1226_v31 }
 0x176   :  { %v663_v62 = vadd.f32 %v1267_v53, %v662_v61  ;;  %v751_v63 = vpop.f32.mrf.mxu3  ;;  %v458_v8 = vmax.f32 %v302_v1, 0.0 }
 0x177   :  { %v459_v12 = vmax.f32 %v391_v2, 0.0 }
 0x178   :  { %v752_v0 = vadd.f32 %v751_v63, %v663_v62 }
 0x17a   :  { %822 = vst [vmem:[#allocation10 + $0x30] sm:$0xff] %v752_v0 }
 0x17b   :  { %v303_v3 = vpop.f32.mrf.mxu0 }
 0x17c   :  { %v304_v4 = vadd.f32 %v303_v3, %v1224_v30  ;;  %v392_v5 = vpop.f32.mrf.mxu1 }
 0x17d   :  { %v393_v6 = vadd.f32 %v392_v5, %v1226_v31  ;;  %v664_v7 = vpop.f32.mrf.mxu2 }
 0x17e   :  { %v460_v9 = vmax.f32 %v304_v4, 0.0  ;;  %v665_v10 = vadd.f32 %v1267_v53, %v664_v7  ;;  %v753_v11 = vpop.f32.mrf.mxu3 }
 0x17f   :  { %v461_v13 = vmax.f32 %v393_v6, 0.0 }
 0x180   :  { %v498_v14 = vpack.c.bf16 %v460_v9, %v458_v8  ;;  %v754_v15 = vadd.f32 %v753_v11, %v665_v10 }
 0x181   :  { %v499_v16 = vpack.c.bf16 %v461_v13, %v459_v12 }
 0x182   :  { %823 = vst [vmem:[#allocation10 + $0x38] sm:$0xff] %v754_v15  ;;  %706 = vmatmul.bf16.gmra.mxu2 %v498_v14 }
 0x183   :  { %795 = vmatmul.bf16.gmra.mxu3 %v499_v16  ;;  %v306_v17 = vpop.f32.mrf.mxu0 }
 0x184   :  { %v395_v18 = vpop.f32.mrf.mxu1  ;;  %v307_v23 = vadd.f32 %v306_v17, %v1224_v30 }
 0x185   :  { %v667_v19 = vpop.f32.mrf.mxu2  ;;  %v396_v24 = vadd.f32 %v395_v18, %v1226_v31 }
 0x186   :  { %v668_v20 = vadd.f32 %v1267_v53, %v667_v19  ;;  %v756_v21 = vpop.f32.mrf.mxu3  ;;  %v462_v32 = vmax.f32 %v307_v23, 0.0 }
 0x187   :  { %v463_v36 = vmax.f32 %v396_v24, 0.0 }
 0x188   :  { %v757_v22 = vadd.f32 %v756_v21, %v668_v20 }
 0x18a   :  { %824 = vst [vmem:[#allocation10 + $0x40] sm:$0xff] %v757_v22 }
 0x18b   :  { %v308_v25 = vpop.f32.mrf.mxu0 }
 0x18c   :  { %v309_v26 = vadd.f32 %v308_v25, %v1224_v30  ;;  %v397_v27 = vpop.f32.mrf.mxu1 }
 0x18d   :  { %v398_v28 = vadd.f32 %v397_v27, %v1226_v31  ;;  %v669_v29 = vpop.f32.mrf.mxu2 }
 0x18e   :  { %v464_v33 = vmax.f32 %v309_v26, 0.0  ;;  %v670_v34 = vadd.f32 %v1267_v53, %v669_v29  ;;  %v758_v35 = vpop.f32.mrf.mxu3 }
 0x18f   :  { %v465_v37 = vmax.f32 %v398_v28, 0.0 }
 0x190   :  { %v500_v38 = vpack.c.bf16 %v464_v33, %v462_v32  ;;  %v759_v39 = vadd.f32 %v758_v35, %v670_v34 }
 0x191   :  { %v501_v40 = vpack.c.bf16 %v465_v37, %v463_v36 }
 0x192   :  { %825 = vst [vmem:[#allocation10 + $0x48] sm:$0xff] %v759_v39  ;;  %711 = vmatmul.bf16.gmra.mxu2 %v500_v38 }
 0x193   :  { %800 = vmatmul.bf16.gmra.mxu3 %v501_v40  ;;  %v311_v41 = vpop.f32.mrf.mxu0 }
 0x194   :  { %v400_v42 = vpop.f32.mrf.mxu1  ;;  %v312_v47 = vadd.f32 %v311_v41, %v1224_v30 }
 0x195   :  { %v672_v43 = vpop.f32.mrf.mxu2  ;;  %v401_v48 = vadd.f32 %v400_v42, %v1226_v31 }
 0x196   :  { %v673_v44 = vadd.f32 %v1267_v53, %v672_v43  ;;  %v761_v45 = vpop.f32.mrf.mxu3  ;;  %v466_v55 = vmax.f32 %v312_v47, 0.0 }
 0x197   :  { %v467_v59 = vmax.f32 %v401_v48, 0.0 }
 0x198   :  { %v762_v46 = vadd.f32 %v761_v45, %v673_v44 }
 0x19a   :  { %826 = vst [vmem:[#allocation10 + $0x50] sm:$0xff] %v762_v46 }
 0x19b   :  { %v313_v49 = vpop.f32.mrf.mxu0 }
 0x19c   :  { %v314_v50 = vadd.f32 %v313_v49, %v1224_v30  ;;  %v402_v51 = vpop.f32.mrf.mxu1 }
 0x19d   :  { %v403_v52 = vadd.f32 %v402_v51, %v1226_v31  ;;  %v674_v54 = vpop.f32.mrf.mxu2 }
 0x19e   :  { %v468_v56 = vmax.f32 %v314_v50, 0.0  ;;  %v675_v57 = vadd.f32 %v1267_v53, %v674_v54  ;;  %v763_v58 = vpop.f32.mrf.mxu3 }
 0x19f   :  { %v469_v60 = vmax.f32 %v403_v52, 0.0 }
 0x1a0   :  { %v502_v61 = vpack.c.bf16 %v468_v56, %v466_v55  ;;  %v764_v62 = vadd.f32 %v763_v58, %v675_v57 }
 0x1a1   :  { %v503_v63 = vpack.c.bf16 %v469_v60, %v467_v59 }
 0x1a2   :  { %827 = vst [vmem:[#allocation10 + $0x58] sm:$0xff] %v764_v62  ;;  %716 = vmatmul.bf16.gmra.mxu2 %v502_v61 }
 0x1a3   :  { %805 = vmatmul.bf16.gmra.mxu3 %v503_v63  ;;  %v316_v0 = vpop.f32.mrf.mxu0 }
 0x1a4   :  { %v405_v1 = vpop.f32.mrf.mxu1  ;;  %v317_v6 = vadd.f32 %v316_v0, %v1224_v30 }
 0x1a5   :  { %v677_v2 = vpop.f32.mrf.mxu2  ;;  %v406_v7 = vadd.f32 %v405_v1, %v1226_v31 }
 0x1a6   :  { %v678_v3 = vadd.f32 %v1267_v53, %v677_v2  ;;  %v766_v4 = vpop.f32.mrf.mxu3  ;;  %v470_v13 = vmax.f32 %v317_v6, 0.0 }
 0x1a7   :  { %v471_v17 = vmax.f32 %v406_v7, 0.0 }
 0x1a8   :  { %v767_v5 = vadd.f32 %v766_v4, %v678_v3 }
 0x1aa   :  { %828 = vst [vmem:[#allocation10 + $0x60] sm:$0xff] %v767_v5 }
 0x1ab   :  { %v318_v8 = vpop.f32.mrf.mxu0 }
 0x1ac   :  { %v319_v9 = vadd.f32 %v318_v8, %v1224_v30  ;;  %v407_v10 = vpop.f32.mrf.mxu1 }
 0x1ad   :  { %v408_v11 = vadd.f32 %v407_v10, %v1226_v31  ;;  %v679_v12 = vpop.f32.mrf.mxu2 }
 0x1ae   :  { %v472_v14 = vmax.f32 %v319_v9, 0.0  ;;  %v680_v15 = vadd.f32 %v1267_v53, %v679_v12  ;;  %v768_v16 = vpop.f32.mrf.mxu3 }
 0x1af   :  { %v473_v18 = vmax.f32 %v408_v11, 0.0 }
 0x1b0   :  { %v504_v19 = vpack.c.bf16 %v472_v14, %v470_v13  ;;  %v769_v20 = vadd.f32 %v768_v16, %v680_v15 }
 0x1b1   :  { %v505_v21 = vpack.c.bf16 %v473_v18, %v471_v17 }
 0x1b2   :  { %829 = vst [vmem:[#allocation10 + $0x68] sm:$0xff] %v769_v20  ;;  %721 = vmatmul.bf16.gmra.mxu2 %v504_v19 }
 0x1b3   :  { %810 = vmatmul.bf16.gmra.mxu3 %v505_v21 }
 0x1b5   :  { %v682_v22 = vpop.f32.mrf.mxu2 }
 0x1b6   :  { %v683_v30 = vadd.f32 %v1267_v53, %v682_v22  ;;  %v771_v23 = vpop.f32.mrf.mxu3 }
 0x1b8   :  { %v772_v24 = vadd.f32 %v771_v23, %v683_v30 }
 0x1ba   :  { %830 = vst [vmem:[#allocation10 + $0x70] sm:$0xff] %v772_v24 }
 0x1bd   :  { %v684_v31 = vpop.f32.mrf.mxu2 }
 0x1be   :  { %v685_v25 = vadd.f32 %v1267_v53, %v684_v31  ;;  %v773_v26 = vpop.f32.mrf.mxu3 }
 0x1c0   :  { %v774_v27 = vadd.f32 %v773_v26, %v685_v25 }
 0x1c2   :  { %831 = vst [vmem:[#allocation10 + $0x78] sm:$0xff] %v774_v27 }
 0x1c5   :  { %v687_v28 = vpop.f32.mrf.mxu2 }
 0x1c6   :  { %v688_v29 = vadd.f32 %v1267_v53, %v687_v28  ;;  %v776_v32 = vpop.f32.mrf.mxu3 }
 0x1c8   :  { %v777_v33 = vadd.f32 %v776_v32, %v688_v29 }
 0x1ca   :  { %832 = vst [vmem:[#allocation10 + $0x80] sm:$0xff] %v777_v33 }
 0x1cd   :  { %v689_v34 = vpop.f32.mrf.mxu2 }
 0x1ce   :  { %v690_v35 = vadd.f32 %v1267_v53, %v689_v34  ;;  %v778_v36 = vpop.f32.mrf.mxu3 }
 0x1d0   :  { %v779_v37 = vadd.f32 %v778_v36, %v690_v35 }
 0x1d2   :  { %833 = vst [vmem:[#allocation10 + $0x88] sm:$0xff] %v779_v37 }
 0x1d5   :  { %v692_v38 = vpop.f32.mrf.mxu2 }
 0x1d6   :  { %v693_v39 = vadd.f32 %v1267_v53, %v692_v38  ;;  %v781_v40 = vpop.f32.mrf.mxu3 }
 0x1d8   :  { %v782_v41 = vadd.f32 %v781_v40, %v693_v39 }
 0x1da   :  { %834 = vst [vmem:[#allocation10 + $0x90] sm:$0xff] %v782_v41 }
 0x1dd   :  { %v694_v42 = vpop.f32.mrf.mxu2 }
 0x1de   :  { %v695_v43 = vadd.f32 %v1267_v53, %v694_v42  ;;  %v783_v44 = vpop.f32.mrf.mxu3 }
 0x1e0   :  { %v784_v45 = vadd.f32 %v783_v44, %v695_v43 }
 0x1e2   :  { %835 = vst [vmem:[#allocation10 + $0x98] sm:$0xff] %v784_v45 }
 0x1e5   :  { %v697_v46 = vpop.f32.mrf.mxu2 }
 0x1e6   :  { %v698_v47 = vadd.f32 %v1267_v53, %v697_v46  ;;  %v786_v48 = vpop.f32.mrf.mxu3 }
 0x1e8   :  { %v787_v49 = vadd.f32 %v786_v48, %v698_v47 }
 0x1ea   :  { %836 = vst [vmem:[#allocation10 + $0xa0] sm:$0xff] %v787_v49 }
 0x1ed   :  { %v699_v50 = vpop.f32.mrf.mxu2 }
 0x1ee   :  { %v700_v51 = vadd.f32 %v1267_v53, %v699_v50  ;;  %v788_v52 = vpop.f32.mrf.mxu3 }
 0x1f0   :  { %v789_v54 = vadd.f32 %v788_v52, %v700_v51 }
 0x1f2   :  { %837 = vst [vmem:[#allocation10 + $0xa8] sm:$0xff] %v789_v54 }
 0x1f5   :  { %v702_v55 = vpop.f32.mrf.mxu2 }
 0x1f6   :  { %v703_v56 = vadd.f32 %v1267_v53, %v702_v55  ;;  %v791_v57 = vpop.f32.mrf.mxu3 }
 0x1f8   :  { %v792_v58 = vadd.f32 %v791_v57, %v703_v56 }
 0x1fa   :  { %838 = vst [vmem:[#allocation10 + $0xb0] sm:$0xff] %v792_v58 }
 0x1fd   :  { %v704_v59 = vpop.f32.mrf.mxu2 }
 0x1fe   :  { %v705_v60 = vadd.f32 %v1267_v53, %v704_v59  ;;  %v793_v61 = vpop.f32.mrf.mxu3 }
 0x200   :  { %v794_v62 = vadd.f32 %v793_v61, %v705_v60 }
 0x202   :  { %839 = vst [vmem:[#allocation10 + $0xb8] sm:$0xff] %v794_v62 }
 0x205   :  { %v707_v63 = vpop.f32.mrf.mxu2 }
 0x206   :  { %v708_v0 = vadd.f32 %v1267_v53, %v707_v63  ;;  %v796_v1 = vpop.f32.mrf.mxu3 }
 0x208   :  { %v797_v2 = vadd.f32 %v796_v1, %v708_v0 }
 0x20a   :  { %840 = vst [vmem:[#allocation10 + $0xc0] sm:$0xff] %v797_v2 }
 0x20d   :  { %v709_v3 = vpop.f32.mrf.mxu2 }
 0x20e   :  { %v710_v4 = vadd.f32 %v1267_v53, %v709_v3  ;;  %v798_v5 = vpop.f32.mrf.mxu3 }
 0x210   :  { %v799_v6 = vadd.f32 %v798_v5, %v710_v4 }
 0x212   :  { %841 = vst [vmem:[#allocation10 + $0xc8] sm:$0xff] %v799_v6 }
 0x215   :  { %v712_v7 = vpop.f32.mrf.mxu2 }
 0x216   :  { %v713_v8 = vadd.f32 %v1267_v53, %v712_v7  ;;  %v801_v9 = vpop.f32.mrf.mxu3 }
 0x218   :  { %v802_v10 = vadd.f32 %v801_v9, %v713_v8 }
 0x21a   :  { %842 = vst [vmem:[#allocation10 + $0xd0] sm:$0xff] %v802_v10 }
 0x21d   :  { %v714_v11 = vpop.f32.mrf.mxu2 }
 0x21e   :  { %v715_v12 = vadd.f32 %v1267_v53, %v714_v11  ;;  %v803_v13 = vpop.f32.mrf.mxu3 }
 0x220   :  { %v804_v14 = vadd.f32 %v803_v13, %v715_v12 }
 0x222   :  { %843 = vst [vmem:[#allocation10 + $0xd8] sm:$0xff] %v804_v14 }
 0x225   :  { %v717_v15 = vpop.f32.mrf.mxu2 }
 0x226   :  { %v718_v16 = vadd.f32 %v1267_v53, %v717_v15  ;;  %v806_v17 = vpop.f32.mrf.mxu3 }
 0x228   :  { %v807_v18 = vadd.f32 %v806_v17, %v718_v16 }
 0x22a   :  { %844 = vst [vmem:[#allocation10 + $0xe0] sm:$0xff] %v807_v18 }
 0x22d   :  { %v719_v19 = vpop.f32.mrf.mxu2 }
 0x22e   :  { %v720_v20 = vadd.f32 %v1267_v53, %v719_v19  ;;  %v808_v21 = vpop.f32.mrf.mxu3 }
 0x230   :  { %v809_v22 = vadd.f32 %v808_v21, %v720_v20 }
 0x232   :  { %845 = vst [vmem:[#allocation10 + $0xe8] sm:$0xff] %v809_v22 }
 0x235   :  { %v722_v30 = vpop.f32.mrf.mxu2 }
 0x236   :  { %v723_v23 = vadd.f32 %v1267_v53, %v722_v30  ;;  %v811_v24 = vpop.f32.mrf.mxu3 }
 0x238   :  { %v812_v31 = vadd.f32 %v811_v24, %v723_v23 }
 0x23a   :  { %846 = vst [vmem:[#allocation10 + $0xf0] sm:$0xff] %v812_v31 }
 0x23d   :  { %v724_v25 = vpop.f32.mrf.mxu2 }
 0x23e   :  { %v725_v26 = vadd.f32 %v1267_v53, %v724_v25  ;;  %v813_v27 = vpop.f32.mrf.mxu3 }
 0x240   :  { %v814_v28 = vadd.f32 %v813_v27, %v725_v26 }
 0x242   :  { %847 = vst [vmem:[#allocation10 + $0xf8] sm:$0xff] %v814_v28 }
 0x243   :  { %860 = dma.vmem_to_hbm [thread:$0]  %s853_s15, 4096, %s855_s18, [#allocation4], %s1168_s26, %s1168_s26, %s1169_s27  }
 0x244   :  { %1165 = dma.done.wait [#allocation4], 4096  }
 0x245   :  { %1166 = vsyncadd [#allocation4], 4294963200 }
 0x246   :  { %865 = vsyncpa [#allocation3], 1 }
 0x247   :  { %866 = vsyncpa [#allocation6], 1 }
 0x248   :  { %867 = vsyncpa [#allocation9], 1 }
 0x249   :  { %868 = vsyncpa [#allocation4], 1 }

// kernel: tpu_custom_call.1
= control target key start
LH: loop header
LB: loop body
LE: loop exit
PB: predicated region body
PF: predicated region fallthrough
CT: control target
= control target key end

     0   :  { %10 = vsyncpa [#allocation3], 0  ;;  %s1335_s0 = inlined_call_operand.hbm [shape: f32[256,128], index: 0, kind: input, shape index: {}]   ;;  %s1336_s1 = inlined_call_operand.hbm [shape: bf16[128,256], index: 1, kind: input, shape index: {}]   ;;  %s1337_s2 = inlined_call_operand.hbm [shape: f32[1,256], index: 2, kind: input, shape index: {}]   ;;  %s1338_s3 = inlined_call_operand.hbm [shape: bf16[256,128], index: 3, kind: input, shape index: {}]   ;;  %s1339_s4 = inlined_call_operand.vmem [shape: f32[1,128], index: 4, kind: input, shape index: {}]   ;;  %s1340_s5 = inlined_call_operand.hbm [shape: f32[256,128], index: 5, kind: output, shape index: {}]  }
   0x1   :  { %11 = vsyncpa [#allocation6], 0 }
   0x2   :  { %12 = vsyncpa [#allocation9], 0 }
   0x3   :  { %13 = vsyncpa [#allocation4], 0  ;;  %s31_s20 = sshll.u32 %s1336_s1, 4  ;;  %s1167_s21 = smov [#allocation5]   ;;  %s32_s20 = int_to_ptr.hbm [resolvable:$true] %s31_s20 }
   0x4   :  { %s33_s22 = sshll.u32 %s1167_s21, 4  ;;  %s18_s25 = sshll.u32 %s1335_s0, 4  ;;  %s34_s22 = int_to_ptr.vmem [resolvable:$true] %s33_s22  ;;  %s19_s25 = int_to_ptr.hbm [resolvable:$true] %s18_s25 }
   0x5   :  { %s1168_s26 = smov 128   ;;  %s1169_s27 = smov 8  }
   0x6   :  { %39 = dma.hbm_to_vmem [thread:$0]  %s32_s20, 2048, %s34_s22, [#allocation6], %s1168_s26, %s1168_s26, %s1169_s27  }
   0x7   :  { %s1170_s28 = smov [#allocation2]   ;;  %s45_s1 = sshll.u32 %s1337_s2, 4  ;;  %s46_s1 = int_to_ptr.hbm [resolvable:$true] %s45_s1 }
   0x8   :  { %s20_s29 = sshll.u32 %s1170_s28, 4  ;;  %s55_s8 = sshll.u32 %s1338_s3, 4  ;;  %s21_s29 = int_to_ptr.vmem [resolvable:$true] %s20_s29  ;;  %s56_s8 = int_to_ptr.hbm [resolvable:$true] %s55_s8 }
   0x9   :  { %26 = dma.hbm_to_vmem [thread:$0]  %s19_s25, 4096, %s21_s29, [#allocation3], %s1168_s26, %s1168_s26, %s1169_s27  }
   0xa   :  { %s1171_s9 = smov [#allocation7]   ;;  %s1172_s11 = smov [#allocation8]  }
   0xb   :  { %s47_s10 = sshll.u32 %s1171_s9, 4  ;;  %s57_s12 = sshll.u32 %s1172_s11, 4  ;;  %s48_s10 = int_to_ptr.vmem [resolvable:$true] %s47_s10  ;;  %s58_s12 = int_to_ptr.vmem [resolvable:$true] %s57_s12 }
   0xc   :  { %50 = dma.hbm_to_vmem [thread:$0]  %s46_s1, 32, %s48_s10, [#allocation6]  }
   0xd   :  { %s1173_s13 = smov 64   ;;  %s1174_s2 = smov 4  }
   0xe   :  { %63 = dma.hbm_to_vmem [thread:$0]  %s56_s8, 2048, %s58_s12, [#allocation9], %s1173_s13, %s1173_s13, %s1174_s2  }
   0xf   :  { %1159 = dma.done.wait [#allocation3], 4096  }
  0x10   :  { %1160 = vsyncadd [#allocation3], 4294963200 }
  0x11   :  { %1161 = dma.done.wait [#allocation6], 2080  }
  0x12   :  { %1162 = vsyncadd [#allocation6], 4294965216 }
  0x13   :  { %1163 = dma.done.wait [#allocation9], 2048  }
  0x14   :  { %1164 = vsyncadd [#allocation9], 4294965248  ;;  %v927_v0 = vld [vmem:[#allocation5 + $0x70] sm:$0xf]  ;;  %v1012_v1 = vld [vmem:[#allocation5 + $0x74] sm:$0xf0] }
  0x15   :  { %v1011_v2 = vld [vmem:[#allocation5 + $0x74] sm:$0xf]  ;;  %v928_v3 = vor.u32 %v1012_v1, %v927_v0  ;;  %v929_v4 = vld [vmem:[#allocation5 + $0x78] sm:$0xf0]  ;;  %v919_v5 = vld [vmem:[#allocation5 + $0x60] sm:$0xf] }
  0x16   :  { %v1010_v6 = vld [vmem:[#allocation5 + $0x64] sm:$0xf0]  ;;  %v932_v7 = vor.u32 %v1011_v2, %v929_v4  ;;  %v1009_v8 = vld [vmem:[#allocation5 + $0x64] sm:$0xf]  ;;  %v921_v9 = vld [vmem:[#allocation5 + $0x68] sm:$0xf0] }
  0x17   :  { %232 = vmatpush.bf16.msra.mxu0 %v928_v3  ;;  %v920_v10 = vor.u32 %v1010_v6, %v919_v5  ;;  %v924_v11 = vor.u32 %v1009_v8, %v921_v9  ;;  %v911_v12 = vld [vmem:[#allocation5 + $0x50] sm:$0xf]  ;;  %v1008_v13 = vld [vmem:[#allocation5 + $0x54] sm:$0xf0]  ;;  %v1007_v14 = vld [vmem:[#allocation5 + $0x54] sm:$0xf] }
  0x18   :  { %321 = vmatpush.bf16.msra.mxu1 %v932_v7  ;;  %v913_v15 = vld [vmem:[#allocation5 + $0x58] sm:$0xf0]  ;;  %v912_v16 = vor.u32 %v1008_v13, %v911_v12  ;;  %v903_v18 = vld [vmem:[#allocation5 + $0x40] sm:$0xf]  ;;  %v1006_v19 = vld [vmem:[#allocation5 + $0x44] sm:$0xf0] }
  0x19   :  { %v916_v17 = vor.u32 %v1007_v14, %v913_v15  ;;  %v1005_v20 = vld [vmem:[#allocation5 + $0x44] sm:$0xf]  ;;  %v905_v21 = vld [vmem:[#allocation5 + $0x48] sm:$0xf0]  ;;  %v904_v22 = vor.u32 %v1006_v19, %v903_v18  ;;  %v895_v24 = vld [vmem:[#allocation5 + $0x30] sm:$0xf] }
  0x1a   :  { %v908_v23 = vor.u32 %v1005_v20, %v905_v21  ;;  %v1004_v25 = vld [vmem:[#allocation5 + $0x34] sm:$0xf0]  ;;  %v1003_v26 = vld [vmem:[#allocation5 + $0x34] sm:$0xf]  ;;  %v897_v27 = vld [vmem:[#allocation5 + $0x38] sm:$0xf0] }
  0x1b   :  { %233 = vmatpush.bf16.msra.mxu0 %v920_v10  ;;  %v896_v28 = vor.u32 %v1004_v25, %v895_v24  ;;  %v900_v29 = vor.u32 %v1003_v26, %v897_v27  ;;  %v887_v30 = vld [vmem:[#allocation5 + $0x20] sm:$0xf]  ;;  %v1002_v31 = vld [vmem:[#allocation5 + $0x24] sm:$0xf0]  ;;  %v1001_v32 = vld [vmem:[#allocation5 + $0x24] sm:$0xf] }
  0x1c   :  { %322 = vmatpush.bf16.msra.mxu1 %v924_v11  ;;  %v889_v33 = vld [vmem:[#allocation5 + $0x28] sm:$0xf0]  ;;  %v888_v34 = vor.u32 %v1002_v31, %v887_v30  ;;  %v879_v36 = vld [vmem:[#allocation5 + $0x10] sm:$0xf]  ;;  %v1000_v37 = vld [vmem:[#allocation5 + $0x14] sm:$0xf0] }
  0x1d   :  { %v892_v35 = vor.u32 %v1001_v32, %v889_v33  ;;  %v999_v38 = vld [vmem:[#allocation5 + $0x14] sm:$0xf]  ;;  %v881_v39 = vld [vmem:[#allocation5 + $0x18] sm:$0xf0]  ;;  %v880_v40 = vor.u32 %v1000_v37, %v879_v36  ;;  %v871_v42 = vld [vmem:[#allocation5] sm:$0xf] }
  0x1e   :  { %v884_v41 = vor.u32 %v999_v38, %v881_v39  ;;  %v998_v43 = vld [vmem:[#allocation5 + $0x4] sm:$0xf0]  ;;  %v997_v44 = vld [vmem:[#allocation5 + $0x4] sm:$0xf]  ;;  %v873_v45 = vld [vmem:[#allocation5 + $0x8] sm:$0xf0] }
  0x1f   :  { %234 = vmatpush.bf16.msra.mxu0 %v912_v16  ;;  %v872_v46 = vor.u32 %v998_v43, %v871_v42  ;;  %v82_v47 = vld [vmem:[#allocation2] sm:$0xff]  ;;  %v83_v48 = vld [vmem:[#allocation2 + $0x8] sm:$0xff]  ;;  %v876_v49 = vor.u32 %v997_v44, %v873_v45  ;;  %v84_v51 = vld [vmem:[#allocation2 + $0x10] sm:$0xff]  ;;  %s854_s18 = sshll.u32 %s1340_s5, 4  ;;  %s855_s18 = int_to_ptr.hbm [resolvable:$true] %s854_s18 }
  0x20   :  { %323 = vmatpush.bf16.msra.mxu1 %v916_v17  ;;  %v114_v50 = vpack.c.bf16 %v83_v48, %v82_v47  ;;  %v85_v52 = vld [vmem:[#allocation2 + $0x18] sm:$0xff]  ;;  %v86_v54 = vld [vmem:[#allocation2 + $0x20] sm:$0xff]  ;;  %v87_v55 = vld [vmem:[#allocation2 + $0x28] sm:$0xff] }
  0x21   :  { %v115_v53 = vpack.c.bf16 %v85_v52, %v84_v51  ;;  %v116_v56 = vpack.c.bf16 %v87_v55, %v86_v54  ;;  %v88_v57 = vld [vmem:[#allocation2 + $0x30] sm:$0xff]  ;;  %v89_v58 = vld [vmem:[#allocation2 + $0x38] sm:$0xff]  ;;  %v90_v60 = vld [vmem:[#allocation2 + $0x40] sm:$0xff] }
  0x22   :  { %v117_v59 = vpack.c.bf16 %v89_v58, %v88_v57  ;;  %v91_v61 = vld [vmem:[#allocation2 + $0x48] sm:$0xff]  ;;  %v1020_v63 = vld [vmem:[#allocation8 + $0x38] sm:$0xff]  ;;  %v92_v1 = vld [vmem:[#allocation2 + $0x50] sm:$0xff] }
  0x23   :  { %235 = vmatpush.bf16.msra.mxu0 %v904_v22  ;;  %v118_v62 = vpack.c.bf16 %v91_v61, %v90_v60  ;;  %v1028_v0 = vld [vmem:[#allocation8 + $0x78] sm:$0xff]  ;;  %638 = vmatpush.bf16.msra.mxu2 %v1020_v63  ;;  %v1019_v4 = vld [vmem:[#allocation8 + $0x30] sm:$0xff]  ;;  %v1018_v6 = vld [vmem:[#allocation8 + $0x28] sm:$0xff] }
  0x24   :  { %324 = vmatpush.bf16.msra.mxu1 %v908_v23  ;;  %727 = vmatpush.bf16.msra.mxu3 %v1028_v0  ;;  %v93_v2 = vld [vmem:[#allocation2 + $0x58] sm:$0xff]  ;;  %v1026_v7 = vld [vmem:[#allocation8 + $0x68] sm:$0xff]  ;;  %v1017_v8 = vld [vmem:[#allocation8 + $0x20] sm:$0xff] }
  0x25   :  { %v119_v3 = vpack.c.bf16 %v93_v2, %v92_v1  ;;  %v1027_v5 = vld [vmem:[#allocation8 + $0x70] sm:$0xff]  ;;  %v1025_v9 = vld [vmem:[#allocation8 + $0x60] sm:$0xff]  ;;  %v1016_v13 = vld [vmem:[#allocation8 + $0x18] sm:$0xff] }
  0x26   :  { %v94_v10 = vld [vmem:[#allocation2 + $0x60] sm:$0xff]  ;;  %v95_v11 = vld [vmem:[#allocation2 + $0x68] sm:$0xff]  ;;  %v1015_v15 = vld [vmem:[#allocation8 + $0x10] sm:$0xff] }
  0x27   :  { %236 = vmatpush.bf16.msra.mxu0 %v896_v28  ;;  %639 = vmatpush.bf16.msra.mxu2 %v1019_v4  ;;  %v120_v12 = vpack.c.bf16 %v95_v11, %v94_v10  ;;  %v1024_v14 = vld [vmem:[#allocation8 + $0x58] sm:$0xff]  ;;  %v1023_v16 = vld [vmem:[#allocation8 + $0x50] sm:$0xff]  ;;  %v1014_v17 = vld [vmem:[#allocation8 + $0x8] sm:$0xff] }
  0x28   :  { %325 = vmatpush.bf16.msra.mxu1 %v900_v29  ;;  %728 = vmatpush.bf16.msra.mxu3 %v1027_v5  ;;  %v1022_v18 = vld [vmem:[#allocation8 + $0x48] sm:$0xff]  ;;  %v1013_v19 = vld [vmem:[#allocation8] sm:$0xff]  ;;  %v97_v22 = vld [vmem:[#allocation2 + $0x78] sm:$0xff] }
  0x29   :  { %v1021_v20 = vld [vmem:[#allocation8 + $0x40] sm:$0xff]  ;;  %v96_v21 = vld [vmem:[#allocation2 + $0x70] sm:$0xff]  ;;  %v146_v27 = vld [vmem:[#allocation7] sm:$0x3] }
  0x2a   :  { %v121_v23 = vpack.c.bf16 %v97_v22, %v96_v21  ;;  %v98_v24 = vld [vmem:[#allocation2 + $0x80] sm:$0xff]  ;;  %v99_v25 = vld [vmem:[#allocation2 + $0x88] sm:$0xff]  ;;  %v1224_v30 = vperm.slane %v146_v27, 0  ;;  %v1226_v31 = vperm.slane %v146_v27, 1  ;;  %v100_v42 = vld [vmem:[#allocation2 + $0x90] sm:$0xff] }
  0x2b   :  { %237 = vmatpush.bf16.msra.mxu0 %v888_v34  ;;  %640 = vmatpush.bf16.msra.mxu2 %v1018_v6  ;;  %v122_v26 = vpack.c.bf16 %v99_v25, %v98_v24  ;;  %v101_v43 = vld [vmem:[#allocation2 + $0x98] sm:$0xff]  ;;  %v103_v60 = vld [vmem:[#allocation2 + $0xa8] sm:$0xff] }
  0x2c   :  { %326 = vmatpush.bf16.msra.mxu1 %v892_v35  ;;  %729 = vmatpush.bf16.msra.mxu3 %v1026_v7 }
  0x2f   :  { %238 = vmatpush.bf16.msra.mxu0 %v880_v40  ;;  %641 = vmatpush.bf16.msra.mxu2 %v1017_v8 }
  0x30   :  { %327 = vmatpush.bf16.msra.mxu1 %v884_v41  ;;  %730 = vmatpush.bf16.msra.mxu3 %v1025_v9 }
  0x33   :  { %239 = vmatpush.bf16.msra.mxu0 %v872_v46  ;;  %642 = vmatpush.bf16.msra.mxu2 %v1016_v13  ;;  %v123_v46 = vpack.c.bf16 %v101_v43, %v100_v42  ;;  %v105_v13 = vld [vmem:[#allocation2 + $0xb8] sm:$0xff] }
  0x34   :  { %328 = vmatpush.bf16.msra.mxu1 %v876_v49  ;;  %731 = vmatpush.bf16.msra.mxu3 %v1024_v14 }
  0x36   :  { %240 = vmatmul.bf16.vlgmr.msra.gmra.mxu0 %v114_v50 }
  0x37   :  { %329 = vmatmul.bf16.vlgmr.msra.gmra.mxu1 %v114_v50  ;;  %643 = vmatpush.bf16.msra.mxu2 %v1015_v15 }
  0x38   :  { %732 = vmatpush.bf16.msra.mxu3 %v1023_v16 }
  0x3b   :  { %644 = vmatpush.bf16.msra.mxu2 %v1014_v17 }
  0x3c   :  { %733 = vmatpush.bf16.msra.mxu3 %v1022_v18 }
  0x3f   :  { %645 = vmatpush.bf16.msra.mxu2 %v1013_v19 }
  0x40   :  { %734 = vmatpush.bf16.msra.mxu3 %v1021_v20 }
  0x46   :  { %245 = vmatmul.bf16.gmra.mxu0 %v115_v53 }
  0x47   :  { %334 = vmatmul.bf16.gmra.mxu1 %v115_v53 }
  0x56   :  { %250 = vmatmul.bf16.gmra.mxu0 %v116_v56 }
  0x57   :  { %339 = vmatmul.bf16.gmra.mxu1 %v116_v56 }
  0x66   :  { %255 = vmatmul.bf16.gmra.mxu0 %v117_v59 }
  0x67   :  { %344 = vmatmul.bf16.gmra.mxu1 %v117_v59  ;;  %v102_v59 = vld [vmem:[#allocation2 + $0xa0] sm:$0xff] }
  0x68   :  { %v124_v63 = vpack.c.bf16 %v103_v60, %v102_v59 }
  0x76   :  { %260 = vmatmul.bf16.gmra.mxu0 %v118_v62 }
  0x77   :  { %349 = vmatmul.bf16.gmra.mxu1 %v118_v62 }
  0x86   :  { %265 = vmatmul.bf16.gmra.mxu0 %v119_v3 }
  0x87   :  { %354 = vmatmul.bf16.gmra.mxu1 %v119_v3 }
  0x96   :  { %270 = vmatmul.bf16.gmra.mxu0 %v120_v12 }
  0x97   :  { %359 = vmatmul.bf16.gmra.mxu1 %v120_v12  ;;  %v104_v12 = vld [vmem:[#allocation2 + $0xb0] sm:$0xff] }
  0x98   :  { %v125_v16 = vpack.c.bf16 %v105_v13, %v104_v12 }
  0xa6   :  { %275 = vmatmul.bf16.gmra.mxu0 %v121_v23 }
  0xa7   :  { %364 = vmatmul.bf16.gmra.mxu1 %v121_v23 }
  0xb3   :  { %v241_v28 = vpop.f32.mrf.mxu0 }
  0xb4   :  { %v330_v29 = vpop.f32.mrf.mxu1  ;;  %v242_v32 = vadd.f32 %v241_v28, %v1224_v30 }
  0xb5   :  { %v331_v33 = vadd.f32 %v330_v29, %v1226_v31  ;;  %v106_v29 = vld [vmem:[#allocation2 + $0xc0] sm:$0xff] }
  0xb6   :  { %280 = vmatmul.bf16.gmra.mxu0 %v122_v26  ;;  %v410_v38 = vmax.f32 %v242_v32, 0.0  ;;  %v107_v32 = vld [vmem:[#allocation2 + $0xc8] sm:$0xff] }
  0xb7   :  { %369 = vmatmul.bf16.gmra.mxu1 %v122_v26  ;;  %v411_v40 = vmax.f32 %v331_v33, 0.0 }
  0xbb   :  { %v243_v34 = vpop.f32.mrf.mxu0 }
  0xbc   :  { %v244_v35 = vadd.f32 %v243_v34, %v1224_v30  ;;  %v332_v36 = vpop.f32.mrf.mxu1 }
  0xbd   :  { %v333_v37 = vadd.f32 %v332_v36, %v1226_v31 }
  0xbe   :  { %v412_v39 = vmax.f32 %v244_v35, 0.0  ;;  %v126_v35 = vpack.c.bf16 %v107_v32, %v106_v29 }
  0xbf   :  { %v413_v41 = vmax.f32 %v333_v37, 0.0 }
  0xc0   :  { %v474_v44 = vpack.c.bf16 %v412_v39, %v410_v38 }
  0xc1   :  { %v475_v45 = vpack.c.bf16 %v413_v41, %v411_v40 }
  0xc2   :  { %646 = vmatmul.bf16.vlgmr.msra.gmra.mxu2 %v474_v44 }
  0xc3   :  { %735 = vmatmul.bf16.vlgmr.msra.gmra.mxu3 %v475_v45  ;;  %v246_v47 = vpop.f32.mrf.mxu0 }
  0xc4   :  { %v335_v48 = vpop.f32.mrf.mxu1  ;;  %v247_v49 = vadd.f32 %v246_v47, %v1224_v30 }
  0xc5   :  { %v336_v50 = vadd.f32 %v335_v48, %v1226_v31  ;;  %v108_v48 = vld [vmem:[#allocation2 + $0xd0] sm:$0xff] }
  0xc6   :  { %285 = vmatmul.bf16.gmra.mxu0 %v123_v46  ;;  %v414_v55 = vmax.f32 %v247_v49, 0.0  ;;  %v109_v49 = vld [vmem:[#allocation2 + $0xd8] sm:$0xff] }
  0xc7   :  { %374 = vmatmul.bf16.gmra.mxu1 %v123_v46  ;;  %v415_v57 = vmax.f32 %v336_v50, 0.0 }
  0xcb   :  { %v248_v51 = vpop.f32.mrf.mxu0 }
  0xcc   :  { %v249_v52 = vadd.f32 %v248_v51, %v1224_v30  ;;  %v337_v53 = vpop.f32.mrf.mxu1 }
  0xcd   :  { %v338_v54 = vadd.f32 %v337_v53, %v1226_v31 }
  0xce   :  { %v416_v56 = vmax.f32 %v249_v52, 0.0  ;;  %v127_v52 = vpack.c.bf16 %v109_v49, %v108_v48 }
  0xcf   :  { %v417_v58 = vmax.f32 %v338_v54, 0.0 }
  0xd0   :  { %v476_v61 = vpack.c.bf16 %v416_v56, %v414_v55 }
  0xd1   :  { %v477_v62 = vpack.c.bf16 %v417_v58, %v415_v57 }
  0xd2   :  { %651 = vmatmul.bf16.gmra.mxu2 %v476_v61 }
  0xd3   :  { %740 = vmatmul.bf16.gmra.mxu3 %v477_v62  ;;  %v251_v0 = vpop.f32.mrf.mxu0 }
  0xd4   :  { %v340_v1 = vpop.f32.mrf.mxu1  ;;  %v252_v2 = vadd.f32 %v251_v0, %v1224_v30 }
  0xd5   :  { %v341_v3 = vadd.f32 %v340_v1, %v1226_v31  ;;  %v110_v1 = vld [vmem:[#allocation2 + $0xe0] sm:$0xff] }
  0xd6   :  { %290 = vmatmul.bf16.gmra.mxu0 %v124_v63  ;;  %v418_v8 = vmax.f32 %v252_v2, 0.0  ;;  %v111_v2 = vld [vmem:[#allocation2 + $0xe8] sm:$0xff] }
  0xd7   :  { %379 = vmatmul.bf16.gmra.mxu1 %v124_v63  ;;  %v419_v10 = vmax.f32 %v341_v3, 0.0 }
  0xdb   :  { %v253_v4 = vpop.f32.mrf.mxu0 }
  0xdc   :  { %v254_v5 = vadd.f32 %v253_v4, %v1224_v30  ;;  %v342_v6 = vpop.f32.mrf.mxu1 }
  0xdd   :  { %v343_v7 = vadd.f32 %v342_v6, %v1226_v31 }
  0xde   :  { %v420_v9 = vmax.f32 %v254_v5, 0.0  ;;  %v128_v5 = vpack.c.bf16 %v111_v2, %v110_v1 }
  0xdf   :  { %v421_v11 = vmax.f32 %v343_v7, 0.0 }
  0xe0   :  { %v478_v14 = vpack.c.bf16 %v420_v9, %v418_v8 }
  0xe1   :  { %v479_v15 = vpack.c.bf16 %v421_v11, %v419_v10 }
  0xe2   :  { %656 = vmatmul.bf16.gmra.mxu2 %v478_v14 }
  0xe3   :  { %745 = vmatmul.bf16.gmra.mxu3 %v479_v15  ;;  %v256_v17 = vpop.f32.mrf.mxu0 }
  0xe4   :  { %v345_v18 = vpop.f32.mrf.mxu1  ;;  %v257_v19 = vadd.f32 %v256_v17, %v1224_v30 }
  0xe5   :  { %v346_v20 = vadd.f32 %v345_v18, %v1226_v31  ;;  %v112_v18 = vld [vmem:[#allocation2 + $0xf0] sm:$0xff] }
  0xe6   :  { %295 = vmatmul.bf16.gmra.mxu0 %v125_v16  ;;  %v422_v25 = vmax.f32 %v257_v19, 0.0  ;;  %v113_v19 = vld [vmem:[#allocation2 + $0xf8] sm:$0xff] }
  0xe7   :  { %384 = vmatmul.bf16.gmra.mxu1 %v125_v16  ;;  %v423_v27 = vmax.f32 %v346_v20, 0.0 }
  0xeb   :  { %v258_v21 = vpop.f32.mrf.mxu0 }
  0xec   :  { %v259_v22 = vadd.f32 %v258_v21, %v1224_v30  ;;  %v347_v23 = vpop.f32.mrf.mxu1 }
  0xed   :  { %v348_v24 = vadd.f32 %v347_v23, %v1226_v31 }
  0xee   :  { %v424_v26 = vmax.f32 %v259_v22, 0.0  ;;  %v129_v22 = vpack.c.bf16 %v113_v19, %v112_v18 }
  0xef   :  { %v425_v28 = vmax.f32 %v348_v24, 0.0 }
  0xf0   :  { %v480_v33 = vpack.c.bf16 %v424_v26, %v422_v25 }
  0xf1   :  { %v481_v34 = vpack.c.bf16 %v425_v28, %v423_v27 }
  0xf2   :  { %661 = vmatmul.bf16.gmra.mxu2 %v480_v33 }
  0xf3   :  { %750 = vmatmul.bf16.gmra.mxu3 %v481_v34  ;;  %v261_v36 = vpop.f32.mrf.mxu0 }
  0xf4   :  { %v350_v37 = vpop.f32.mrf.mxu1  ;;  %v262_v38 = vadd.f32 %v261_v36, %v1224_v30 }
  0xf5   :  { %v351_v39 = vadd.f32 %v350_v37, %v1226_v31 }
  0xf6   :  { %300 = vmatmul.bf16.gmra.mxu0 %v126_v35  ;;  %v426_v44 = vmax.f32 %v262_v38, 0.0 }
  0xf7   :  { %389 = vmatmul.bf16.gmra.mxu1 %v126_v35  ;;  %v427_v46 = vmax.f32 %v351_v39, 0.0 }
  0xfb   :  { %v263_v40 = vpop.f32.mrf.mxu0 }
  0xfc   :  { %v264_v41 = vadd.f32 %v263_v40, %v1224_v30  ;;  %v352_v42 = vpop.f32.mrf.mxu1 }
  0xfd   :  { %v353_v43 = vadd.f32 %v352_v42, %v1226_v31 }
  0xfe   :  { %v428_v45 = vmax.f32 %v264_v41, 0.0 }
  0xff   :  { %v429_v47 = vmax.f32 %v353_v43, 0.0 }
 0x100   :  { %v482_v50 = vpack.c.bf16 %v428_v45, %v426_v44 }
 0x101   :  { %v483_v51 = vpack.c.bf16 %v429_v47, %v427_v46 }
 0x102   :  { %666 = vmatmul.bf16.gmra.mxu2 %v482_v50 }
 0x103   :  { %755 = vmatmul.bf16.gmra.mxu3 %v483_v51  ;;  %v266_v53 = vpop.f32.mrf.mxu0 }
 0x104   :  { %v355_v54 = vpop.f32.mrf.mxu1  ;;  %v267_v55 = vadd.f32 %v266_v53, %v1224_v30  ;;  %v1267_v53 = vld [vmem:[%s1339_s4] ss:$0 sm:$0xff]  ;;  %s1175_s4 = smov [#allocation10]  }
 0x105   :  { %v356_v56 = vadd.f32 %v355_v54, %v1226_v31  ;;  %s852_s15 = sshll.u32 %s1175_s4, 4  ;;  %s853_s15 = int_to_ptr.vmem [resolvable:$true] %s852_s15 }
 0x106   :  { %305 = vmatmul.bf16.gmra.mxu0 %v127_v52  ;;  %v430_v61 = vmax.f32 %v267_v55, 0.0 }
 0x107   :  { %394 = vmatmul.bf16.gmra.mxu1 %v127_v52  ;;  %v431_v63 = vmax.f32 %v356_v56, 0.0 }
 0x10b   :  { %v268_v57 = vpop.f32.mrf.mxu0 }
 0x10c   :  { %v269_v58 = vadd.f32 %v268_v57, %v1224_v30  ;;  %v357_v59 = vpop.f32.mrf.mxu1 }
 0x10d   :  { %v358_v60 = vadd.f32 %v357_v59, %v1226_v31 }
 0x10e   :  { %v432_v62 = vmax.f32 %v269_v58, 0.0 }
 0x10f   :  { %v433_v0 = vmax.f32 %v358_v60, 0.0 }
 0x110   :  { %v484_v3 = vpack.c.bf16 %v432_v62, %v430_v61 }
 0x111   :  { %v485_v4 = vpack.c.bf16 %v433_v0, %v431_v63 }
 0x112   :  { %671 = vmatmul.bf16.gmra.mxu2 %v484_v3 }
 0x113   :  { %760 = vmatmul.bf16.gmra.mxu3 %v485_v4  ;;  %v271_v6 = vpop.f32.mrf.mxu0 }
 0x114   :  { %v360_v7 = vpop.f32.mrf.mxu1  ;;  %v272_v8 = vadd.f32 %v271_v6, %v1224_v30 }
 0x115   :  { %v361_v9 = vadd.f32 %v360_v7, %v1226_v31 }
 0x116   :  { %310 = vmatmul.bf16.gmra.mxu0 %v128_v5  ;;  %v434_v14 = vmax.f32 %v272_v8, 0.0 }
 0x117   :  { %399 = vmatmul.bf16.gmra.mxu1 %v128_v5  ;;  %v435_v16 = vmax.f32 %v361_v9, 0.0 }
 0x11b   :  { %v273_v10 = vpop.f32.mrf.mxu0 }
 0x11c   :  { %v274_v11 = vadd.f32 %v273_v10, %v1224_v30  ;;  %v362_v12 = vpop.f32.mrf.mxu1 }
 0x11d   :  { %v363_v13 = vadd.f32 %v362_v12, %v1226_v31 }
 0x11e   :  { %v436_v15 = vmax.f32 %v274_v11, 0.0 }
 0x11f   :  { %v437_v17 = vmax.f32 %v363_v13, 0.0 }
 0x120   :  { %v486_v20 = vpack.c.bf16 %v436_v15, %v434_v14 }
 0x121   :  { %v487_v21 = vpack.c.bf16 %v437_v17, %v435_v16 }
 0x122   :  { %676 = vmatmul.bf16.gmra.mxu2 %v486_v20 }
 0x123   :  { %765 = vmatmul.bf16.gmra.mxu3 %v487_v21  ;;  %v276_v23 = vpop.f32.mrf.mxu0 }
 0x124   :  { %v365_v24 = vpop.f32.mrf.mxu1  ;;  %v277_v25 = vadd.f32 %v276_v23, %v1224_v30 }
 0x125   :  { %v366_v26 = vadd.f32 %v365_v24, %v1226_v31 }
 0x126   :  { %315 = vmatmul.bf16.gmra.mxu0 %v129_v22  ;;  %v438_v33 = vmax.f32 %v277_v25, 0.0 }
 0x127   :  { %404 = vmatmul.bf16.gmra.mxu1 %v129_v22  ;;  %v439_v35 = vmax.f32 %v366_v26, 0.0 }
 0x12b   :  { %v278_v27 = vpop.f32.mrf.mxu0 }
 0x12c   :  { %v279_v28 = vadd.f32 %v278_v27, %v1224_v30  ;;  %v367_v29 = vpop.f32.mrf.mxu1 }
 0x12d   :  { %v368_v32 = vadd.f32 %v367_v29, %v1226_v31 }
 0x12e   :  { %v440_v34 = vmax.f32 %v279_v28, 0.0 }
 0x12f   :  { %v441_v36 = vmax.f32 %v368_v32, 0.0 }
 0x130   :  { %v488_v37 = vpack.c.bf16 %v440_v34, %v438_v33 }
 0x131   :  { %v489_v38 = vpack.c.bf16 %v441_v36, %v439_v35 }
 0x132   :  { %681 = vmatmul.bf16.gmra.mxu2 %v488_v37 }
 0x133   :  { %770 = vmatmul.bf16.gmra.mxu3 %v489_v38  ;;  %v281_v39 = vpop.f32.mrf.mxu0 }
 0x134   :  { %v370_v40 = vpop.f32.mrf.mxu1  ;;  %v282_v41 = vadd.f32 %v281_v39, %v1224_v30 }
 0x135   :  { %v371_v42 = vadd.f32 %v370_v40, %v1226_v31 }
 0x136   :  { %v442_v47 = vmax.f32 %v282_v41, 0.0 }
 0x137   :  { %v443_v49 = vmax.f32 %v371_v42, 0.0 }
 0x13b   :  { %v283_v43 = vpop.f32.mrf.mxu0 }
 0x13c   :  { %v284_v44 = vadd.f32 %v283_v43, %v1224_v30  ;;  %v372_v45 = vpop.f32.mrf.mxu1 }
 0x13d   :  { %v373_v46 = vadd.f32 %v372_v45, %v1226_v31 }
 0x13e   :  { %v444_v48 = vmax.f32 %v284_v44, 0.0 }
 0x13f   :  { %v445_v50 = vmax.f32 %v373_v46, 0.0 }
 0x140   :  { %v490_v51 = vpack.c.bf16 %v444_v48, %v442_v47 }
 0x141   :  { %v491_v52 = vpack.c.bf16 %v445_v50, %v443_v49 }
 0x142   :  { %686 = vmatmul.bf16.gmra.mxu2 %v490_v51 }
 0x143   :  { %775 = vmatmul.bf16.gmra.mxu3 %v491_v52  ;;  %v286_v54 = vpop.f32.mrf.mxu0 }
 0x144   :  { %v375_v55 = vpop.f32.mrf.mxu1  ;;  %v287_v60 = vadd.f32 %v286_v54, %v1224_v30 }
 0x145   :  { %v647_v56 = vpop.f32.mrf.mxu2  ;;  %v376_v61 = vadd.f32 %v375_v55, %v1226_v31 }
 0x146   :  { %v648_v57 = vadd.f32 %v1267_v53, %v647_v56  ;;  %v736_v58 = vpop.f32.mrf.mxu3  ;;  %v446_v3 = vmax.f32 %v287_v60, 0.0 }
 0x147   :  { %v447_v7 = vmax.f32 %v376_v61, 0.0 }
 0x148   :  { %v737_v59 = vadd.f32 %v736_v58, %v648_v57 }
 0x14a   :  { %816 = vst [vmem:[#allocation10] sm:$0xff] %v737_v59 }
 0x14b   :  { %v288_v62 = vpop.f32.mrf.mxu0 }
 0x14c   :  { %v289_v63 = vadd.f32 %v288_v62, %v1224_v30  ;;  %v377_v0 = vpop.f32.mrf.mxu1 }
 0x14d   :  { %v378_v1 = vadd.f32 %v377_v0, %v1226_v31  ;;  %v649_v2 = vpop.f32.mrf.mxu2 }
 0x14e   :  { %v448_v4 = vmax.f32 %v289_v63, 0.0  ;;  %v650_v5 = vadd.f32 %v1267_v53, %v649_v2  ;;  %v738_v6 = vpop.f32.mrf.mxu3 }
 0x14f   :  { %v449_v8 = vmax.f32 %v378_v1, 0.0 }
 0x150   :  { %v739_v9 = vadd.f32 %v738_v6, %v650_v5  ;;  %v492_v10 = vpack.c.bf16 %v448_v4, %v446_v3 }
 0x151   :  { %v493_v11 = vpack.c.bf16 %v449_v8, %v447_v7 }
 0x152   :  { %817 = vst [vmem:[#allocation10 + $0x8] sm:$0xff] %v739_v9  ;;  %691 = vmatmul.bf16.gmra.mxu2 %v492_v10 }
 0x153   :  { %780 = vmatmul.bf16.gmra.mxu3 %v493_v11  ;;  %v291_v12 = vpop.f32.mrf.mxu0 }
 0x154   :  { %v380_v13 = vpop.f32.mrf.mxu1  ;;  %v292_v18 = vadd.f32 %v291_v12, %v1224_v30 }
 0x155   :  { %v652_v14 = vpop.f32.mrf.mxu2  ;;  %v381_v19 = vadd.f32 %v380_v13, %v1226_v31 }
 0x156   :  { %v653_v15 = vadd.f32 %v1267_v53, %v652_v14  ;;  %v741_v16 = vpop.f32.mrf.mxu3  ;;  %v450_v25 = vmax.f32 %v292_v18, 0.0 }
 0x157   :  { %v451_v29 = vmax.f32 %v381_v19, 0.0 }
 0x158   :  { %v742_v17 = vadd.f32 %v741_v16, %v653_v15 }
 0x15a   :  { %818 = vst [vmem:[#allocation10 + $0x10] sm:$0xff] %v742_v17 }
 0x15b   :  { %v293_v20 = vpop.f32.mrf.mxu0 }
 0x15c   :  { %v294_v21 = vadd.f32 %v293_v20, %v1224_v30  ;;  %v382_v22 = vpop.f32.mrf.mxu1 }
 0x15d   :  { %v383_v23 = vadd.f32 %v382_v22, %v1226_v31  ;;  %v654_v24 = vpop.f32.mrf.mxu2 }
 0x15e   :  { %v452_v26 = vmax.f32 %v294_v21, 0.0  ;;  %v655_v27 = vadd.f32 %v1267_v53, %v654_v24  ;;  %v743_v28 = vpop.f32.mrf.mxu3 }
 0x15f   :  { %v453_v32 = vmax.f32 %v383_v23, 0.0 }
 0x160   :  { %v744_v33 = vadd.f32 %v743_v28, %v655_v27  ;;  %v494_v34 = vpack.c.bf16 %v452_v26, %v450_v25 }
 0x161   :  { %v495_v35 = vpack.c.bf16 %v453_v32, %v451_v29 }
 0x162   :  { %819 = vst [vmem:[#allocation10 + $0x18] sm:$0xff] %v744_v33  ;;  %696 = vmatmul.bf16.gmra.mxu2 %v494_v34 }
 0x163   :  { %785 = vmatmul.bf16.gmra.mxu3 %v495_v35  ;;  %v296_v36 = vpop.f32.mrf.mxu0 }
 0x164   :  { %v385_v37 = vpop.f32.mrf.mxu1  ;;  %v297_v42 = vadd.f32 %v296_v36, %v1224_v30 }
 0x165   :  { %v657_v38 = vpop.f32.mrf.mxu2  ;;  %v386_v43 = vadd.f32 %v385_v37, %v1226_v31 }
 0x166   :  { %v658_v39 = vadd.f32 %v1267_v53, %v657_v38  ;;  %v746_v40 = vpop.f32.mrf.mxu3  ;;  %v454_v49 = vmax.f32 %v297_v42, 0.0 }
 0x167   :  { %v455_v54 = vmax.f32 %v386_v43, 0.0 }
 0x168   :  { %v747_v41 = vadd.f32 %v746_v40, %v658_v39 }
 0x16a   :  { %820 = vst [vmem:[#allocation10 + $0x20] sm:$0xff] %v747_v41 }
 0x16b   :  { %v298_v44 = vpop.f32.mrf.mxu0 }
 0x16c   :  { %v299_v45 = vadd.f32 %v298_v44, %v1224_v30  ;;  %v387_v46 = vpop.f32.mrf.mxu1 }
 0x16d   :  { %v388_v47 = vadd.f32 %v387_v46, %v1226_v31  ;;  %v659_v48 = vpop.f32.mrf.mxu2 }
 0x16e   :  { %v456_v50 = vmax.f32 %v299_v45, 0.0  ;;  %v660_v51 = vadd.f32 %v1267_v53, %v659_v48  ;;  %v748_v52 = vpop.f32.mrf.mxu3 }
 0x16f   :  { %v457_v55 = vmax.f32 %v388_v47, 0.0 }
 0x170   :  { %v749_v56 = vadd.f32 %v748_v52, %v660_v51  ;;  %v496_v57 = vpack.c.bf16 %v456_v50, %v454_v49 }
 0x171   :  { %v497_v58 = vpack.c.bf16 %v457_v55, %v455_v54 }
 0x172   :  { %821 = vst [vmem:[#allocation10 + $0x28] sm:$0xff] %v749_v56  ;;  %701 = vmatmul.bf16.gmra.mxu2 %v496_v57 }
 0x173   :  { %790 = vmatmul.bf16.gmra.mxu3 %v497_v58  ;;  %v301_v59 = vpop.f32.mrf.mxu0 }
 0x174   :  { %v390_v60 = vpop.f32.mrf.mxu1  ;;  %v302_v1 = vadd.f32 %v301_v59, %v1224_v30 }
 0x175   :  { %v662_v61 = vpop.f32.mrf.mxu2  ;;  %v391_v2 = vadd.f32 %v390_v60, %v1226_v31 }
 0x176   :  { %v663_v62 = vadd.f32 %v1267_v53, %v662_v61  ;;  %v751_v63 = vpop.f32.mrf.mxu3  ;;  %v458_v8 = vmax.f32 %v302_v1, 0.0 }
 0x177   :  { %v459_v12 = vmax.f32 %v391_v2, 0.0 }
 0x178   :  { %v752_v0 = vadd.f32 %v751_v63, %v663_v62 }
 0x17a   :  { %822 = vst [vmem:[#allocation10 + $0x30] sm:$0xff] %v752_v0 }
 0x17b   :  { %v303_v3 = vpop.f32.mrf.mxu0 }
 0x17c   :  { %v304_v4 = vadd.f32 %v303_v3, %v1224_v30  ;;  %v392_v5 = vpop.f32.mrf.mxu1 }
 0x17d   :  { %v393_v6 = vadd.f32 %v392_v5, %v1226_v31  ;;  %v664_v7 = vpop.f32.mrf.mxu2 }
 0x17e   :  { %v460_v9 = vmax.f32 %v304_v4, 0.0  ;;  %v665_v10 = vadd.f32 %v1267_v53, %v664_v7  ;;  %v753_v11 = vpop.f32.mrf.mxu3 }
 0x17f   :  { %v461_v13 = vmax.f32 %v393_v6, 0.0 }
 0x180   :  { %v498_v14 = vpack.c.bf16 %v460_v9, %v458_v8  ;;  %v754_v15 = vadd.f32 %v753_v11, %v665_v10 }
 0x181   :  { %v499_v16 = vpack.c.bf16 %v461_v13, %v459_v12 }
 0x182   :  { %823 = vst [vmem:[#allocation10 + $0x38] sm:$0xff] %v754_v15  ;;  %706 = vmatmul.bf16.gmra.mxu2 %v498_v14 }
 0x183   :  { %795 = vmatmul.bf16.gmra.mxu3 %v499_v16  ;;  %v306_v17 = vpop.f32.mrf.mxu0 }
 0x184   :  { %v395_v18 = vpop.f32.mrf.mxu1  ;;  %v307_v23 = vadd.f32 %v306_v17, %v1224_v30 }
 0x185   :  { %v667_v19 = vpop.f32.mrf.mxu2  ;;  %v396_v24 = vadd.f32 %v395_v18, %v1226_v31 }
 0x186   :  { %v668_v20 = vadd.f32 %v1267_v53, %v667_v19  ;;  %v756_v21 = vpop.f32.mrf.mxu3  ;;  %v462_v32 = vmax.f32 %v307_v23, 0.0 }
 0x187   :  { %v463_v36 = vmax.f32 %v396_v24, 0.0 }
 0x188   :  { %v757_v22 = vadd.f32 %v756_v21, %v668_v20 }
 0x18a   :  { %824 = vst [vmem:[#allocation10 + $0x40] sm:$0xff] %v757_v22 }
 0x18b   :  { %v308_v25 = vpop.f32.mrf.mxu0 }
 0x18c   :  { %v309_v26 = vadd.f32 %v308_v25, %v1224_v30  ;;  %v397_v27 = vpop.f32.mrf.mxu1 }
 0x18d   :  { %v398_v28 = vadd.f32 %v397_v27, %v1226_v31  ;;  %v669_v29 = vpop.f32.mrf.mxu2 }
 0x18e   :  { %v464_v33 = vmax.f32 %v309_v26, 0.0  ;;  %v670_v34 = vadd.f32 %v1267_v53, %v669_v29  ;;  %v758_v35 = vpop.f32.mrf.mxu3 }
 0x18f   :  { %v465_v37 = vmax.f32 %v398_v28, 0.0 }
 0x190   :  { %v500_v38 = vpack.c.bf16 %v464_v33, %v462_v32  ;;  %v759_v39 = vadd.f32 %v758_v35, %v670_v34 }
 0x191   :  { %v501_v40 = vpack.c.bf16 %v465_v37, %v463_v36 }
 0x192   :  { %825 = vst [vmem:[#allocation10 + $0x48] sm:$0xff] %v759_v39  ;;  %711 = vmatmul.bf16.gmra.mxu2 %v500_v38 }
 0x193   :  { %800 = vmatmul.bf16.gmra.mxu3 %v501_v40  ;;  %v311_v41 = vpop.f32.mrf.mxu0 }
 0x194   :  { %v400_v42 = vpop.f32.mrf.mxu1  ;;  %v312_v47 = vadd.f32 %v311_v41, %v1224_v30 }
 0x195   :  { %v672_v43 = vpop.f32.mrf.mxu2  ;;  %v401_v48 = vadd.f32 %v400_v42, %v1226_v31 }
 0x196   :  { %v673_v44 = vadd.f32 %v1267_v53, %v672_v43  ;;  %v761_v45 = vpop.f32.mrf.mxu3  ;;  %v466_v55 = vmax.f32 %v312_v47, 0.0 }
 0x197   :  { %v467_v59 = vmax.f32 %v401_v48, 0.0 }
 0x198   :  { %v762_v46 = vadd.f32 %v761_v45, %v673_v44 }
 0x19a   :  { %826 = vst [vmem:[#allocation10 + $0x50] sm:$0xff] %v762_v46 }
 0x19b   :  { %v313_v49 = vpop.f32.mrf.mxu0 }
 0x19c   :  { %v314_v50 = vadd.f32 %v313_v49, %v1224_v30  ;;  %v402_v51 = vpop.f32.mrf.mxu1 }
 0x19d   :  { %v403_v52 = vadd.f32 %v402_v51, %v1226_v31  ;;  %v674_v54 = vpop.f32.mrf.mxu2 }
 0x19e   :  { %v468_v56 = vmax.f32 %v314_v50, 0.0  ;;  %v675_v57 = vadd.f32 %v1267_v53, %v674_v54  ;;  %v763_v58 = vpop.f32.mrf.mxu3 }
 0x19f   :  { %v469_v60 = vmax.f32 %v403_v52, 0.0 }
 0x1a0   :  { %v502_v61 = vpack.c.bf16 %v468_v56, %v466_v55  ;;  %v764_v62 = vadd.f32 %v763_v58, %v675_v57 }
 0x1a1   :  { %v503_v63 = vpack.c.bf16 %v469_v60, %v467_v59 }
 0x1a2   :  { %827 = vst [vmem:[#allocation10 + $0x58] sm:$0xff] %v764_v62  ;;  %716 = vmatmul.bf16.gmra.mxu2 %v502_v61 }
 0x1a3   :  { %805 = vmatmul.bf16.gmra.mxu3 %v503_v63  ;;  %v316_v0 = vpop.f32.mrf.mxu0 }
 0x1a4   :  { %v405_v1 = vpop.f32.mrf.mxu1  ;;  %v317_v6 = vadd.f32 %v316_v0, %v1224_v30 }
 0x1a5   :  { %v677_v2 = vpop.f32.mrf.mxu2  ;;  %v406_v7 = vadd.f32 %v405_v1, %v1226_v31 }
 0x1a6   :  { %v678_v3 = vadd.f32 %v1267_v53, %v677_v2  ;;  %v766_v4 = vpop.f32.mrf.mxu3  ;;  %v470_v13 = vmax.f32 %v317_v6, 0.0 }
 0x1a7   :  { %v471_v17 = vmax.f32 %v406_v7, 0.0 }
 0x1a8   :  { %v767_v5 = vadd.f32 %v766_v4, %v678_v3 }
 0x1aa   :  { %828 = vst [vmem:[#allocation10 + $0x60] sm:$0xff] %v767_v5 }
 0x1ab   :  { %v318_v8 = vpop.f32.mrf.mxu0 }
 0x1ac   :  { %v319_v9 = vadd.f32 %v318_v8, %v1224_v30  ;;  %v407_v10 = vpop.f32.mrf.mxu1 }
 0x1ad   :  { %v408_v11 = vadd.f32 %v407_v10, %v1226_v31  ;;  %v679_v12 = vpop.f32.mrf.mxu2 }
 0x1ae   :  { %v472_v14 = vmax.f32 %v319_v9, 0.0  ;;  %v680_v15 = vadd.f32 %v1267_v53, %v679_v12  ;;  %v768_v16 = vpop.f32.mrf.mxu3 }
 0x1af   :  { %v473_v18 = vmax.f32 %v408_v11, 0.0 }
 0x1b0   :  { %v504_v19 = vpack.c.bf16 %v472_v14, %v470_v13  ;;  %v769_v20 = vadd.f32 %v768_v16, %v680_v15 }
 0x1b1   :  { %v505_v21 = vpack.c.bf16 %v473_v18, %v471_v17 }
 0x1b2   :  { %829 = vst [vmem:[#allocation10 + $0x68] sm:$0xff] %v769_v20  ;;  %721 = vmatmul.bf16.gmra.mxu2 %v504_v19 }
 0x1b3   :  { %810 = vmatmul.bf16.gmra.mxu3 %v505_v21 }
 0x1b5   :  { %v682_v22 = vpop.f32.mrf.mxu2 }
 0x1b6   :  { %v683_v30 = vadd.f32 %v1267_v53, %v682_v22  ;;  %v771_v23 = vpop.f32.mrf.mxu3 }
 0x1b8   :  { %v772_v24 = vadd.f32 %v771_v23, %v683_v30 }
 0x1ba   :  { %830 = vst [vmem:[#allocation10 + $0x70] sm:$0xff] %v772_v24 }
 0x1bd   :  { %v684_v31 = vpop.f32.mrf.mxu2 }
 0x1be   :  { %v685_v25 = vadd.f32 %v1267_v53, %v684_v31  ;;  %v773_v26 = vpop.f32.mrf.mxu3 }
 0x1c0   :  { %v774_v27 = vadd.f32 %v773_v26, %v685_v25 }
 0x1c2   :  { %831 = vst [vmem:[#allocation10 + $0x78] sm:$0xff] %v774_v27 }
 0x1c5   :  { %v687_v28 = vpop.f32.mrf.mxu2 }
 0x1c6   :  { %v688_v29 = vadd.f32 %v1267_v53, %v687_v28  ;;  %v776_v32 = vpop.f32.mrf.mxu3 }
 0x1c8   :  { %v777_v33 = vadd.f32 %v776_v32, %v688_v29 }
 0x1ca   :  { %832 = vst [vmem:[#allocation10 + $0x80] sm:$0xff] %v777_v33 }
 0x1cd   :  { %v689_v34 = vpop.f32.mrf.mxu2 }
 0x1ce   :  { %v690_v35 = vadd.f32 %v1267_v53, %v689_v34  ;;  %v778_v36 = vpop.f32.mrf.mxu3 }
 0x1d0   :  { %v779_v37 = vadd.f32 %v778_v36, %v690_v35 }
 0x1d2   :  { %833 = vst [vmem:[#allocation10 + $0x88] sm:$0xff] %v779_v37 }
 0x1d5   :  { %v692_v38 = vpop.f32.mrf.mxu2 }
 0x1d6   :  { %v693_v39 = vadd.f32 %v1267_v53, %v692_v38  ;;  %v781_v40 = vpop.f32.mrf.mxu3 }
 0x1d8   :  { %v782_v41 = vadd.f32 %v781_v40, %v693_v39 }
 0x1da   :  { %834 = vst [vmem:[#allocation10 + $0x90] sm:$0xff] %v782_v41 }
 0x1dd   :  { %v694_v42 = vpop.f32.mrf.mxu2 }
 0x1de   :  { %v695_v43 = vadd.f32 %v1267_v53, %v694_v42  ;;  %v783_v44 = vpop.f32.mrf.mxu3 }
 0x1e0   :  { %v784_v45 = vadd.f32 %v783_v44, %v695_v43 }
 0x1e2   :  { %835 = vst [vmem:[#allocation10 + $0x98] sm:$0xff] %v784_v45 }
 0x1e5   :  { %v697_v46 = vpop.f32.mrf.mxu2 }
 0x1e6   :  { %v698_v47 = vadd.f32 %v1267_v53, %v697_v46  ;;  %v786_v48 = vpop.f32.mrf.mxu3 }
 0x1e8   :  { %v787_v49 = vadd.f32 %v786_v48, %v698_v47 }
 0x1ea   :  { %836 = vst [vmem:[#allocation10 + $0xa0] sm:$0xff] %v787_v49 }
 0x1ed   :  { %v699_v50 = vpop.f32.mrf.mxu2 }
 0x1ee   :  { %v700_v51 = vadd.f32 %v1267_v53, %v699_v50  ;;  %v788_v52 = vpop.f32.mrf.mxu3 }
 0x1f0   :  { %v789_v54 = vadd.f32 %v788_v52, %v700_v51 }
 0x1f2   :  { %837 = vst [vmem:[#allocation10 + $0xa8] sm:$0xff] %v789_v54 }
 0x1f5   :  { %v702_v55 = vpop.f32.mrf.mxu2 }
 0x1f6   :  { %v703_v56 = vadd.f32 %v1267_v53, %v702_v55  ;;  %v791_v57 = vpop.f32.mrf.mxu3 }
 0x1f8   :  { %v792_v58 = vadd.f32 %v791_v57, %v703_v56 }
 0x1fa   :  { %838 = vst [vmem:[#allocation10 + $0xb0] sm:$0xff] %v792_v58 }
 0x1fd   :  { %v704_v59 = vpop.f32.mrf.mxu2 }
 0x1fe   :  { %v705_v60 = vadd.f32 %v1267_v53, %v704_v59  ;;  %v793_v61 = vpop.f32.mrf.mxu3 }
 0x200   :  { %v794_v62 = vadd.f32 %v793_v61, %v705_v60 }
 0x202   :  { %839 = vst [vmem:[#allocation10 + $0xb8] sm:$0xff] %v794_v62 }
 0x205   :  { %v707_v63 = vpop.f32.mrf.mxu2 }
 0x206   :  { %v708_v0 = vadd.f32 %v1267_v53, %v707_v63  ;;  %v796_v1 = vpop.f32.mrf.mxu3 }
 0x208   :  { %v797_v2 = vadd.f32 %v796_v1, %v708_v0 }
 0x20a   :  { %840 = vst [vmem:[#allocation10 + $0xc0] sm:$0xff] %v797_v2 }
 0x20d   :  { %v709_v3 = vpop.f32.mrf.mxu2 }
 0x20e   :  { %v710_v4 = vadd.f32 %v1267_v53, %v709_v3  ;;  %v798_v5 = vpop.f32.mrf.mxu3 }
 0x210   :  { %v799_v6 = vadd.f32 %v798_v5, %v710_v4 }
 0x212   :  { %841 = vst [vmem:[#allocation10 + $0xc8] sm:$0xff] %v799_v6 }
 0x215   :  { %v712_v7 = vpop.f32.mrf.mxu2 }
 0x216   :  { %v713_v8 = vadd.f32 %v1267_v53, %v712_v7  ;;  %v801_v9 = vpop.f32.mrf.mxu3 }
 0x218   :  { %v802_v10 = vadd.f32 %v801_v9, %v713_v8 }
 0x21a   :  { %842 = vst [vmem:[#allocation10 + $0xd0] sm:$0xff] %v802_v10 }
 0x21d   :  { %v714_v11 = vpop.f32.mrf.mxu2 }
 0x21e   :  { %v715_v12 = vadd.f32 %v1267_v53, %v714_v11  ;;  %v803_v13 = vpop.f32.mrf.mxu3 }
 0x220   :  { %v804_v14 = vadd.f32 %v803_v13, %v715_v12 }
 0x222   :  { %843 = vst [vmem:[#allocation10 + $0xd8] sm:$0xff] %v804_v14 }
 0x225   :  { %v717_v15 = vpop.f32.mrf.mxu2 }
 0x226   :  { %v718_v16 = vadd.f32 %v1267_v53, %v717_v15  ;;  %v806_v17 = vpop.f32.mrf.mxu3 }
 0x228   :  { %v807_v18 = vadd.f32 %v806_v17, %v718_v16 }
 0x22a   :  { %844 = vst [vmem:[#allocation10 + $0xe0] sm:$0xff] %v807_v18 }
 0x22d   :  { %v719_v19 = vpop.f32.mrf.mxu2 }
 0x22e   :  { %v720_v20 = vadd.f32 %v1267_v53, %v719_v19  ;;  %v808_v21 = vpop.f32.mrf.mxu3 }
 0x230   :  { %v809_v22 = vadd.f32 %v808_v21, %v720_v20 }
 0x232   :  { %845 = vst [vmem:[#allocation10 + $0xe8] sm:$0xff] %v809_v22 }
 0x235   :  { %v722_v30 = vpop.f32.mrf.mxu2 }
 0x236   :  { %v723_v23 = vadd.f32 %v1267_v53, %v722_v30  ;;  %v811_v24 = vpop.f32.mrf.mxu3 }
 0x238   :  { %v812_v31 = vadd.f32 %v811_v24, %v723_v23 }
 0x23a   :  { %846 = vst [vmem:[#allocation10 + $0xf0] sm:$0xff] %v812_v31 }
 0x23d   :  { %v724_v25 = vpop.f32.mrf.mxu2 }
 0x23e   :  { %v725_v26 = vadd.f32 %v1267_v53, %v724_v25  ;;  %v813_v27 = vpop.f32.mrf.mxu3 }
 0x240   :  { %v814_v28 = vadd.f32 %v813_v27, %v725_v26 }
 0x242   :  { %847 = vst [vmem:[#allocation10 + $0xf8] sm:$0xff] %v814_v28 }
 0x243   :  { %860 = dma.vmem_to_hbm [thread:$0]  %s853_s15, 4096, %s855_s18, [#allocation4], %s1168_s26, %s1168_s26, %s1169_s27  }
 0x244   :  { %1165 = dma.done.wait [#allocation4], 4096  }
 0x245   :  { %1166 = vsyncadd [#allocation4], 4294963200 }
 0x246   :  { %865 = vsyncpa [#allocation3], 1 }
 0x247   :  { %866 = vsyncpa [#allocation6], 1 }
 0x248   :  { %867 = vsyncpa [#allocation9], 1 }
 0x249   :  { %868 = vsyncpa [#allocation4], 1 }

</bundles_post_ra>
